<compile_context>
chip_gen: v5e
topology: v5e:2x2
jax: 0.10.0
libtpu: 0.0.40
codegen_flags: <defaults>
</compile_context>

<pallas_src>
import functools
import math

import jax
import jax.numpy as jnp
from jax.experimental import pallas as pl
from jax.experimental.pallas import tpu as pltpu


def _los_kernel(t_ref, vw_ref, side_ref, nb_ref, emp_ref,
                *, sigma: float, inv_norm: float, neg_half_inv_var: float):
    # Native-dtype loads, f32 compute.
    t = t_ref[...].astype(jnp.float32)      # (TR, S) depth samples
    vw = vw_ref[...].astype(jnp.float32)    # (TR, S) volume-rendering weights
    side = side_ref[...]                    # (TR, 2) f32: [:,0]=gt depth, [:,1]=mask
    gt = side[:, 0:1]                       # (TR, 1)
    m = side[:, 1:2]                        # (TR, 1) 0/1 per-ray mask

    lo = gt - sigma                         # (TR, 1)
    hi = gt + sigma                         # (TR, 1)

    diff = t - gt                           # (TR, S)
    # exp(Normal(0, std).log_prob(diff)) with std = sigma / sigma_scale_factor,
    # strength-reduced: inv_norm * exp(-0.5/std^2 * diff^2)
    pdf = inv_norm * jnp.exp(diff * diff * neg_half_inv_var)

    d = vw - pdf
    nb_elem = jnp.where((t <= hi) & (t >= lo), d * d, 0.0) * m    # (TR, S)
    emp_elem = jnp.where(t < lo, vw * vw, 0.0) * m                # (TR, S)

    # Lane-dense (8, S) per-tile partial sums.  The reshape only regroups rows
    # into sublane tiles (layout no-op, 8 == sublane tile); the axis-0 sum is
    # plain VALU adds -- no carried accumulator, so the grid axis stays
    # "parallel".
    tr, s = nb_elem.shape
    nb_ref[0] = jnp.sum(nb_elem.reshape(tr // 8, 8, s), axis=0)
    emp_ref[0] = jnp.sum(emp_elem.reshape(tr // 8, 8, s), axis=0)


def _round_up(x, m):
    return (x + m - 1) // m * m


def _pick_tile_rays(n: int, s: int, dtype_bytes: int) -> int:
    # Min sublane tile: 8 rows for 32-bit dtypes, 16 for 16-bit packed dtypes.
    min_tr = 16 if dtype_bytes < 4 else 8
    # Keep 2 inputs x 2 pipeline buffers of the big tiles under ~16 MiB so the
    # explicit scoped-VMEM request (with headroom) stays safe on every chip
    # (v5e/v6e: 128 MiB physical, v7x: 64 MiB physical).
    budget = 16 * 1024 * 1024
    tr = 2048
    while tr > min_tr and 4 * tr * s * dtype_bytes > budget:
        tr //= 2
    tr = max(tr, min_tr)
    # Don't tile wider than needed for the (rounded-up) number of hit rays;
    # keep the tile a power-of-two multiple of min_tr for clean layouts.
    need = pl.next_power_of_2(_round_up(n, min_tr))
    return min(tr, max(need, min_tr))


def los_partial_sums(depth_samples, vw, depth_gt_hit, mask_on_hit,
                     *, sigma: float, sigma_scale_factor: float,
                     tile_rays=None):
    """Returns (sum_i mask_i * neighbor_loss_i, sum_i mask_i * empty_loss_i)."""
    n, s = depth_samples.shape
    in_dtype = depth_samples.dtype
    dtype_bytes = jnp.dtype(in_dtype).itemsize

    if tile_rays is None:
        tile_rays = _pick_tile_rays(n, s, dtype_bytes)
    assert tile_rays % 8 == 0

    # Per-ray sidecar stays f32 (cheap, and keeps the +/- sigma compares
    # exact); gt depth and mask are packed into one (N, 2) array so only one
    # small side stream is DMA'd / double-buffered.
    side = jnp.stack(
        [depth_gt_hit.reshape(n).astype(jnp.float32),
         mask_on_hit.reshape(n).astype(jnp.float32)], axis=-1)   # (N, 2)
    t = depth_samples          # native dtype (bf16 stays bf16 in HBM)
    vw_in = vw                 # native dtype

    # Pad the (dynamic) hit-ray count up to a tile multiple; padded rays carry
    # mask = 0 and finite t/gt so they contribute exactly 0.
    n_pad = (-n) % tile_rays
    if n_pad:
        t = jnp.pad(t, ((0, n_pad), (0, 0)))
        vw_in = jnp.pad(vw_in, ((0, n_pad), (0, 0)))
        side = jnp.pad(side, ((0, n_pad), (0, 0)))
    n_total = n + n_pad
    num_tiles = n_total // tile_rays

    std = sigma / sigma_scale_factor
    kernel = functools.partial(
        _los_kernel,
        sigma=float(sigma),
        inv_norm=float(1.0 / (std * math.sqrt(2.0 * math.pi))),
        neg_half_inv_var=float(-0.5 / (std * std)),
    )

    # Scoped-VMEM request: double-buffered big inputs + lane-padded (TR,2)
    # sidecar + the two small partial-sum output blocks, with 2x headroom for
    # compiler temporaries.  Clamped to stay safe on v5e / v6e / v7x.
    vmem_needed = (4 * tile_rays * s * dtype_bytes      # t, vw (x2 pipeline bufs)
                   + 2 * tile_rays * 128 * 4            # side ((TR,2) lane-padded)
                   + 4 * 8 * s * 4)                     # partial-sum blocks
    vmem_limit = int(min(48 * 1024 * 1024,
                         max(32 * 1024 * 1024, 2 * vmem_needed)))

    cost = pl.CostEstimate(
        flops=20 * n_total * s,
        transcendentals=n_total * s,
        bytes_accessed=(2 * n_total * s * dtype_bytes + 2 * n_total * 4
                        + 2 * num_tiles * 8 * s * 4),
    )

    nb_part, emp_part = pl.pallas_call(
        kernel,
        out_shape=(jax.ShapeDtypeStruct((num_tiles, 8, s), jnp.float32),
                   jax.ShapeDtypeStruct((num_tiles, 8, s), jnp.float32)),
        grid_spec=pltpu.PrefetchScalarGridSpec(
            num_scalar_prefetch=0,
            grid=(num_tiles,),
            in_specs=[
                pl.BlockSpec((tile_rays, s), lambda i: (i, 0)),
                pl.BlockSpec((tile_rays, s), lambda i: (i, 0)),
                pl.BlockSpec((tile_rays, 2), lambda i: (i, 0)),
            ],
            out_specs=[
                pl.BlockSpec((1, 8, s), lambda i: (i, 0, 0)),
                pl.BlockSpec((1, 8, s), lambda i: (i, 0, 0)),
            ],
        ),
        compiler_params=pltpu.CompilerParams(
            dimension_semantics=("parallel",),
            vmem_limit_bytes=vmem_limit),
        cost_estimate=cost,
    )(t, vw_in, side)

    # Tiny final reduction over per-tile partials in plain JAX (f32).
    return jnp.sum(nb_part), jnp.sum(emp_part)


def line_of_sight_loss_nerf_batched(ret, ground_truth, mask, *,
                                    w: float = 1.0,
                                    sigma: float = 1.0,
                                    sigma_scale_factor: float = 3.0):
    """JAX port of LineOfSightLoss.fn_for_nerf, buffer_type == 'batched'.

    ret['volume_buffer']: dict with 'ray_inds_hit' (N_hit,), 't' (N_hit, S), 'vw' (N_hit, S)
    ret['rendered']['depth_volume']: (N_rays,)
    ground_truth['ranges']: (N_rays,)
    mask: (N_rays,) bool
    """
    vb = ret['volume_buffer']
    ray_inds_hit = vb['ray_inds_hit']
    depth_samples = vb['t']
    vw = vb['vw']

    depth_pred = ret['rendered']['depth_volume']
    depth_gt = ground_truth['ranges'].astype(depth_pred.dtype).reshape(depth_pred.shape)

    # glue: gathers by hit-ray index
    mask_on_hit = mask[ray_inds_hit]
    depth_gt_hit = depth_gt[ray_inds_hit]

    nb_sum, emp_sum = los_partial_sums(
        depth_samples, vw, depth_gt_hit, mask_on_hit,
        sigma=sigma, sigma_scale_factor=sigma_scale_factor)

    n_hit = depth_samples.shape[0]
    return {
        'lidar_loss.los.neighbor': w * (nb_sum / n_hit),
        'lidar_loss.los.empty': w * (emp_sum / n_hit),
    }
    # TODO(synk): 'packed' buffer_type (ragged repeat_interleave + packed_sum) and
    # annealing schedules (get_annealer/get_anneal_val) are runtime config, not implemented.


def _reference(depth_samples, vw, depth_gt_hit, mask_on_hit, *, w, sigma, sigma_scale_factor):
    std = sigma / sigma_scale_factor
    ds = depth_samples.astype(jnp.float32)
    vwf = vw.astype(jnp.float32)
    gt = depth_gt_hit.astype(jnp.float32)[:, None]
    diff = ds - gt
    pdf = jnp.exp(-0.5 * (diff / std) ** 2) / (std * math.sqrt(2.0 * math.pi))
    nb_mask = (ds <= gt + sigma) & (ds >= gt - sigma)
    nb_loss = jnp.sum(nb_mask * (vwf - pdf) ** 2, axis=-1)
    emp_mask = ds < gt - sigma
    emp_loss = jnp.sum(emp_mask * vwf ** 2, axis=-1)
    mf = mask_on_hit.astype(jnp.float32)
    return (w * jnp.mean(nb_loss * mf), w * jnp.mean(emp_loss * mf))


def _make_case(key, n_rays, n_hit, s, dtype):
    k1, k2, k3, k4, k5 = jax.random.split(key, 5)
    ray_inds_hit = jax.random.permutation(k1, n_rays)[:n_hit]
    t = jnp.sort(jax.random.uniform(k2, (n_hit, s), minval=0.0, maxval=10.0), axis=-1)
    raw_w = jax.random.uniform(k3, (n_hit, s))
    vw = raw_w / jnp.sum(raw_w, axis=-1, keepdims=True)
    ranges = jax.random.uniform(k4, (n_rays,), minval=1.0, maxval=9.0)
    depth_volume = ranges + 0.1 * jax.random.normal(k5, (n_rays,))
    mask = ranges > 2.0
    ret = {
        'volume_buffer': {
            'buffer_type': 'batched',
            'ray_inds_hit': ray_inds_hit,
            't': t.astype(dtype),
            'vw': vw.astype(dtype),
        },
        'rendered': {'depth_volume': depth_volume},
    }
    ground_truth = {'ranges': ranges}
    return ret, ground_truth, mask


if __name__ == "__main__":
    key = jax.random.PRNGKey(0)
    k_a, k_b = jax.random.split(key)

    # Case 1: f32 inputs, tile-aligned N_hit -- check against pure-JAX reference.
    ret, ground_truth, mask = _make_case(k_a, n_rays=512, n_hit=256, s=128,
                                         dtype=jnp.float32)
    losses = line_of_sight_loss_nerf_batched(
        ret, ground_truth, mask, w=1.0, sigma=1.0, sigma_scale_factor=3.0)
    jax.block_until_ready(losses)

    vb = ret['volume_buffer']
    ref_nb, ref_emp = _reference(
        vb['t'], vb['vw'],
        ground_truth['ranges'][vb['ray_inds_hit']], mask[vb['ray_inds_hit']],
        w=1.0, sigma=1.0, sigma_scale_factor=3.0)
    assert jnp.allclose(losses['lidar_loss.los.neighbor'], ref_nb, rtol=1e-4, atol=1e-6)
    assert jnp.allclose(losses['lidar_loss.los.empty'], ref_emp, rtol=1e-4, atol=1e-6)

    # Case 2: bf16 t/vw with a non-tile-aligned N_hit (exercises native-dtype
    # DMA + in-kernel upcast + mask-0 padding path).
    ret2, ground_truth2, mask2 = _make_case(k_b, n_rays=400, n_hit=200, s=256,
                                            dtype=jnp.bfloat16)
    losses2 = line_of_sight_loss_nerf_batched(
        ret2, ground_truth2, mask2, w=1.0, sigma=1.0, sigma_scale_factor=3.0)
    jax.block_until_ready(losses2)

    vb2 = ret2['volume_buffer']
    ref_nb2, ref_emp2 = _reference(
        vb2['t'], vb2['vw'],
        ground_truth2['ranges'][vb2['ray_inds_hit']], mask2[vb2['ray_inds_hit']],
        w=1.0, sigma=1.0, sigma_scale_factor=3.0)
    assert jnp.allclose(losses2['lidar_loss.los.neighbor'], ref_nb2, rtol=2e-4, atol=1e-6)
    assert jnp.allclose(losses2['lidar_loss.los.empty'], ref_emp2, rtol=2e-4, atol=1e-6)

    print("KERNEL_OK")
</pallas_src>

<mosaic_0001>
module attributes {stable_mosaic.version = 11 : i64} {
  func.func @_los_kernel(%arg0: i32, %arg1: memref<256x128xf32, #tpu.memory_space<vmem>>, %arg2: memref<256x128xf32, #tpu.memory_space<vmem>>, %arg3: memref<256x2xf32, #tpu.memory_space<vmem>>, %arg4: memref<1x8x128xf32, #tpu.memory_space<vmem>>, %arg5: memref<1x8x128xf32, #tpu.memory_space<vmem>>) attributes {dimension_semantics = [#tpu.dimension_semantics<parallel>], iteration_bounds = array<i64: 1>, scalar_prefetch = 0 : i64, scratch_operands = 0 : i64, tpu.core_type = #tpu.core_type<tc>, window_params = [{transform_indices = @transform_0, window_bounds = array<i64: 256, 128>}, {transform_indices = @transform_1, window_bounds = array<i64: 256, 128>}, {transform_indices = @transform_2, window_bounds = array<i64: 256, 2>}, {transform_indices = @transform_3, window_bounds = array<i64: 1, 8, 128>}, {transform_indices = @transform_4, window_bounds = array<i64: 1, 8, 128>}]} {
    %c0 = arith.constant 0 : index
    %c0_0 = arith.constant 0 : index
    %0 = vector.load %arg1[%c0, %c0_0] : memref<256x128xf32, #tpu.memory_space<vmem>>, vector<256x128xf32>
    %c0_1 = arith.constant 0 : index
    %c0_2 = arith.constant 0 : index
    %1 = vector.load %arg2[%c0_1, %c0_2] : memref<256x128xf32, #tpu.memory_space<vmem>>, vector<256x128xf32>
    %c0_3 = arith.constant 0 : index
    %c0_4 = arith.constant 0 : index
    %2 = vector.load %arg3[%c0_3, %c0_4] : memref<256x2xf32, #tpu.memory_space<vmem>>, vector<256x2xf32>
    %3 = vector.extract_strided_slice %2 {offsets = [0, 0], sizes = [256, 1], strides = [1, 1]} : vector<256x2xf32> to vector<256x1xf32>
    %4 = vector.extract_strided_slice %2 {offsets = [0, 1], sizes = [256, 1], strides = [1, 1]} : vector<256x2xf32> to vector<256x1xf32>
    %cst = arith.constant 1.000000e+00 : f32
    %5 = vector.broadcast %cst : f32 to vector<256x1xf32>
    %6 = arith.subf %3, %5 : vector<256x1xf32>
    %cst_5 = arith.constant 1.000000e+00 : f32
    %7 = vector.broadcast %cst_5 : f32 to vector<256x1xf32>
    %8 = arith.addf %3, %7 : vector<256x1xf32>
    %9 = vector.broadcast %3 : vector<256x1xf32> to vector<256x128xf32>
    %10 = arith.subf %0, %9 : vector<256x128xf32>
    %11 = arith.mulf %10, %10 : vector<256x128xf32>
    %cst_6 = arith.constant -4.500000e+00 : f32
    %12 = vector.broadcast %cst_6 : f32 to vector<256x128xf32>
    %13 = arith.mulf %11, %12 : vector<256x128xf32>
    %14 = math.exp %13 : vector<256x128xf32>
    %cst_7 = arith.constant 1.19682682 : f32
    %15 = vector.broadcast %cst_7 : f32 to vector<256x128xf32>
    %16 = arith.mulf %15, %14 : vector<256x128xf32>
    %17 = arith.subf %1, %16 : vector<256x128xf32>
    %18 = vector.broadcast %8 : vector<256x1xf32> to vector<256x128xf32>
    %19 = arith.cmpf ole, %0, %18 : vector<256x128xf32>
    %20 = vector.broadcast %6 : vector<256x1xf32> to vector<256x128xf32>
    %21 = arith.cmpf oge, %0, %20 : vector<256x128xf32>
    %22 = arith.andi %19, %21 : vector<256x128xi1>
    %23 = arith.mulf %17, %17 : vector<256x128xf32>
    %cst_8 = arith.constant 0.000000e+00 : f32
    %24 = vector.broadcast %cst_8 : f32 to vector<256x128xf32>
    %25 = arith.select %22, %23, %24 : vector<256x128xi1>, vector<256x128xf32>
    %26 = vector.broadcast %4 : vector<256x1xf32> to vector<256x128xf32>
    %27 = arith.mulf %25, %26 : vector<256x128xf32>
    %28 = vector.broadcast %6 : vector<256x1xf32> to vector<256x128xf32>
    %29 = arith.cmpf olt, %0, %28 : vector<256x128xf32>
    %30 = arith.mulf %1, %1 : vector<256x128xf32>
    %cst_9 = arith.constant 0.000000e+00 : f32
    %31 = vector.broadcast %cst_9 : f32 to vector<256x128xf32>
    %32 = arith.select %29, %30, %31 : vector<256x128xi1>, vector<256x128xf32>
    %33 = vector.broadcast %4 : vector<256x1xf32> to vector<256x128xf32>
    %34 = arith.mulf %32, %33 : vector<256x128xf32>
    %35 = vector.shape_cast %27 : vector<256x128xf32> to vector<32x8x128xf32>
    %cst_10 = arith.constant dense<0.000000e+00> : vector<8x128xf32>
    %36 = vector.multi_reduction <add>, %35, %cst_10 [0] : vector<32x8x128xf32> to vector<8x128xf32>
    %c0_11 = arith.constant 0 : index
    %c0_12 = arith.constant 0 : index
    %c0_13 = arith.constant 0 : index
    %37 = vector.load %arg4[%c0_11, %c0_12, %c0_13] : memref<1x8x128xf32, #tpu.memory_space<vmem>>, vector<1x8x128xf32>
    %38 = vector.shape_cast %37 : vector<1x8x128xf32> to vector<8x128xf32>
    %39 = vector.shape_cast %36 : vector<8x128xf32> to vector<1x8x128xf32>
    tpu.vector_store %arg4[%c0_11, %c0_12, %c0_13], %39 {strides = array<i32>} : memref<1x8x128xf32, #tpu.memory_space<vmem>>, vector<1x8x128xf32>,
    %40 = vector.shape_cast %34 : vector<256x128xf32> to vector<32x8x128xf32>
    %cst_14 = arith.constant dense<0.000000e+00> : vector<8x128xf32>
    %41 = vector.multi_reduction <add>, %40, %cst_14 [0] : vector<32x8x128xf32> to vector<8x128xf32>
    %c0_15 = arith.constant 0 : index
    %c0_16 = arith.constant 0 : index
    %c0_17 = arith.constant 0 : index
    %42 = vector.load %arg5[%c0_15, %c0_16, %c0_17] : memref<1x8x128xf32, #tpu.memory_space<vmem>>, vector<1x8x128xf32>
    %43 = vector.shape_cast %42 : vector<1x8x128xf32> to vector<8x128xf32>
    %44 = vector.shape_cast %41 : vector<8x128xf32> to vector<1x8x128xf32>
    tpu.vector_store %arg5[%c0_15, %c0_16, %c0_17], %44 {strides = array<i32>} : memref<1x8x128xf32, #tpu.memory_space<vmem>>, vector<1x8x128xf32>,
    return
  }
  func.func @transform_0(%arg0: i32) -> (i32, i32) {
    %c0_i32 = arith.constant 0 : i32
    %c0_i32_0 = arith.constant 0 : i32
    return %arg0, %c0_i32 : i32, i32
  }
  func.func @transform_1(%arg0: i32) -> (i32, i32) {
    %c0_i32 = arith.constant 0 : i32
    %c0_i32_0 = arith.constant 0 : i32
    return %arg0, %c0_i32 : i32, i32
  }
  func.func @transform_2(%arg0: i32) -> (i32, i32) {
    %c0_i32 = arith.constant 0 : i32
    %c0_i32_0 = arith.constant 0 : i32
    return %arg0, %c0_i32 : i32, i32
  }
  func.func @transform_3(%arg0: i32) -> (i32, i32, i32) {
    %c0_i32 = arith.constant 0 : i32
    %c0_i32_0 = arith.constant 0 : i32
    %c0_i32_1 = arith.constant 0 : i32
    return %arg0, %c0_i32, %c0_i32_0 : i32, i32, i32
  }
  func.func @transform_4(%arg0: i32) -> (i32, i32, i32) {
    %c0_i32 = arith.constant 0 : i32
    %c0_i32_0 = arith.constant 0 : i32
    %c0_i32_1 = arith.constant 0 : i32
    return %arg0, %c0_i32, %c0_i32_0 : i32, i32, i32
  }
}

</mosaic_0001>

<bundles_post_ra>
// kernel: tpu_custom_call.1
= control target key start
LH: loop header
LB: loop body
LE: loop exit
PB: predicated region body
PF: predicated region fallthrough
CT: control target
= control target key end

     0   :  { %10 = vsyncpa [#allocation3], 0  ;;  %s3264_s0 = inlined_call_operand.vmem [shape: f32[256,128], index: 0, kind: input, shape index: {}]   ;;  %s3265_s1 = inlined_call_operand.hbm [shape: f32[256,128], index: 1, kind: input, shape index: {}]   ;;  %s3266_s2 = inlined_call_operand.vmem [shape: f32[256,2], index: 2, kind: input, shape index: {}]   ;;  %s3267_s3 = inlined_call_operand.hbm [shape: f32[1,8,128], index: 3, kind: output, shape index: {0}]   ;;  %s3268_s4 = inlined_call_operand.hbm [shape: f32[1,8,128], index: 4, kind: output, shape index: {1}]  }
   0x1   :  { %11 = vsyncpa [#allocation4], 0 }
   0x2   :  { %12 = vsyncpa [#allocation7], 0  ;;  %s19_s17 = sshll.u32 %s3265_s1, 4  ;;  %s1665_s18 = smov [#allocation2]   ;;  %s20_s17 = int_to_ptr.hbm [resolvable:$true] %s19_s17 }
   0x3   :  { %s21_s19 = sshll.u32 %s1665_s18, 4  ;;  %s1666_s20 = smov 128   ;;  %s22_s19 = int_to_ptr.vmem [resolvable:$true] %s21_s19 }
   0x4   :  { %s1667_s21 = smov 8  }
   0x5   :  { %27 = dma.hbm_to_vmem [thread:$0]  %s20_s17, 4096, %s22_s19, [#allocation3], %s1666_s20, %s1666_s20, %s1667_s21  }
   0x6   :  { %1659 = dma.done.wait [#allocation3], 4096  }
   0x7   :  { %1660 = vsyncadd [#allocation3], 4294963200  ;;  %v1668_v0 = vmov 0   ;;  %v1703_v1 = vld [vmem:[%s3266_s2 + $0x20] sm:$0xff]  ;;  %v1708_v2 = vld [vmem:[%s3266_s2 + $0x10] sm:$0xff]  ;;  %s1417_s27 = sshll.u32 %s3267_s3, 4  ;;  %s1418_s27 = int_to_ptr.hbm [resolvable:$true] %s1417_s27 }
   0x8   :  { %1484 = vset.pattern.permute.xlu2 %v1668_v0  ;;  %1483 = vset.pattern.permute.xlu1 %v1668_v0  ;;  %v1713_v3 = vld [vmem:[%s3266_s2] sm:$0xff]  ;;  %v1721_v4 = vld [vmem:[%s3266_s2 + $0x28] sm:$0xff]  ;;  %v1726_v5 = vld [vmem:[%s3266_s2 + $0x18] sm:$0xff]  ;;  %v164_v34 = vadd.f32 1.0, %v1708_v2  ;;  %v166_v40 = vadd.f32 1.0, %v1703_v1  ;;  %s1671_s28 = smov [#allocation6]  }
   0x9   :  { %1482 = vset.pattern.permute.xlu0 %v1668_v0  ;;  %216 = vperm.xlu2 %1484, %v1703_v1   ;;  %v1731_v6 = vld [vmem:[%s3266_s2 + $0x8] sm:$0xff]  ;;  %v1739_v7 = vld [vmem:[%s3266_s2 + $0x40] sm:$0xff]  ;;  %v1744_v8 = vld [vmem:[%s3266_s2 + $0x38] sm:$0xff]  ;;  %v162_v31 = vadd.f32 1.0, %v1713_v3  ;;  %v165_v35 = vadd.f32 1.0, %v1726_v5  ;;  %v167_v38 = vadd.f32 1.0, %v1721_v4 }
   0xa   :  { %206 = vperm.xlu1 %1483, %v1708_v2   ;;  %196 = vperm.xlu0 %1482, %v1713_v3   ;;  %v1749_v9 = vld [vmem:[%s3266_s2 + $0x30] sm:$0xff]  ;;  %v1757_v10 = vld [vmem:[%s3266_s2 + $0x58] sm:$0xff]  ;;  %v1767_v12 = vld [vmem:[%s3266_s2 + $0x48] sm:$0xff]  ;;  %v163_v36 = vadd.f32 1.0, %v1731_v6  ;;  %v170_v42 = vadd.f32 1.0, %v1739_v7  ;;  %v169_v44 = vadd.f32 1.0, %v1744_v8 }
   0xb   :  { %v1762_v11 = vld [vmem:[%s3266_s2 + $0x50] sm:$0xff]  ;;  %v1780_v14 = vld [vmem:[%s3266_s2 + $0x68] sm:$0xff]  ;;  %v1785_v15 = vld [vmem:[%s3266_s2 + $0x60] sm:$0xff]  ;;  %v168_v39 = vadd.f32 1.0, %v1749_v9  ;;  %v171_v43 = vadd.f32 1.0, %v1767_v12  ;;  %v173_v46 = vadd.f32 1.0, %v1757_v10 }
   0xc   :  { %v1775_v13 = vld [vmem:[%s3266_s2 + $0x70] sm:$0xff]  ;;  %v1793_v16 = vld [vmem:[%s3266_s2 + $0x88] sm:$0xff]  ;;  %v1798_v17 = vld [vmem:[%s3266_s2 + $0x80] sm:$0xff]  ;;  %v174_v47 = vadd.f32 1.0, %v1785_v15  ;;  %v172_v48 = vadd.f32 1.0, %v1762_v11  ;;  %v175_v54 = vadd.f32 1.0, %v1780_v14 }
   0xd   :  { %v1803_v18 = vld [vmem:[%s3266_s2 + $0x78] sm:$0xff]  ;;  %v1811_v19 = vld [vmem:[%s3266_s2 + $0xa0] sm:$0xff]  ;;  %v1821_v21 = vld [vmem:[%s3266_s2 + $0x90] sm:$0xff]  ;;  %v176_v52 = vadd.f32 1.0, %v1775_v13  ;;  %v179_v58 = vadd.f32 1.0, %v1793_v16  ;;  %v178_v60 = vadd.f32 1.0, %v1798_v17 }
   0xe   :  { %3386 = vst [vmem:[#allocation11_spill] sm:$0xff] %v1803_v18  ;;  %v1816_v20 = vld [vmem:[%s3266_s2 + $0x98] sm:$0xff]  ;;  %v1834_v23 = vld [vmem:[%s3266_s2 + $0xb0] sm:$0xff]  ;;  %v1839_v24 = vld [vmem:[%s3266_s2 + $0xa8] sm:$0xff]  ;;  %v177_v53 = vadd.f32 1.0, %v1803_v18  ;;  %v180_v59 = vadd.f32 1.0, %v1821_v21 }
   0xf   :  { %3387 = vst [vmem:[#allocation12_spill] sm:$0xff] %v1816_v20  ;;  %v1829_v22 = vld [vmem:[%s3266_s2 + $0xb8] sm:$0xff]  ;;  %v1847_v25 = vld [vmem:[%s3266_s2 + $0xd0] sm:$0xff]  ;;  %v1852_v26 = vld [vmem:[%s3266_s2 + $0xc8] sm:$0xff]  ;;  %v182_v0 = vadd.f32 1.0, %v1811_v19  ;;  %s1426_s29 = sshll.u32 %s1671_s28, 4  ;;  %s1427_s29 = int_to_ptr.vmem [resolvable:$true] %s1426_s29 }
  0x10   :  { %v1857_v27 = vld [vmem:[%s3266_s2 + $0xc0] sm:$0xff]  ;;  %v1865_v28 = vld [vmem:[%s3266_s2 + $0xe8] sm:$0xff]  ;;  %v1875_v30 = vld [vmem:[%s3266_s2 + $0xd8] sm:$0xff]  ;;  %s1428_s6 = sshll.u32 %s3268_s4, 4  ;;  %s1429_s6 = int_to_ptr.hbm [resolvable:$true] %s1428_s6 }
  0x11   :  { %221 = vperm.xlu2 %1484, %v1721_v4   ;;  %v1870_v29 = vld [vmem:[%s3266_s2 + $0xe0] sm:$0xff]  ;;  %v1884_v32 = vld [vmem:[%s3266_s2 + $0xf8] sm:$0xff]  ;;  %v1889_v33 = vld [vmem:[%s3266_s2 + $0xf0] sm:$0xff] }
  0x12   :  { %211 = vperm.xlu1 %1483, %v1726_v5   ;;  %201 = vperm.xlu0 %1482, %v1731_v6  }
  0x19   :  { %236 = vperm.xlu2 %1484, %v1739_v7  }
  0x1a   :  { %231 = vperm.xlu1 %1483, %v1744_v8   ;;  %226 = vperm.xlu0 %1482, %v1749_v9  }
  0x21   :  { %251 = vperm.xlu2 %1484, %v1757_v10  }
  0x22   :  { %246 = vperm.xlu1 %1483, %v1762_v11   ;;  %241 = vperm.xlu0 %1482, %v1767_v12  }
  0x29   :  { %266 = vperm.xlu2 %1484, %v1775_v13  }
  0x2a   :  { %261 = vperm.xlu1 %1483, %v1780_v14   ;;  %256 = vperm.xlu0 %1482, %v1785_v15  }
  0x31   :  { %281 = vperm.xlu2 %1484, %v1793_v16  }
  0x32   :  { %276 = vperm.xlu1 %1483, %v1798_v17   ;;  %271 = vperm.xlu0 %1482, %v1803_v18  }
  0x39   :  { %296 = vperm.xlu2 %1484, %v1811_v19  }
  0x3a   :  { %291 = vperm.xlu1 %1483, %v1816_v20   ;;  %286 = vperm.xlu0 %1482, %v1821_v21  }
  0x41   :  { %311 = vperm.xlu2 %1484, %v1829_v22  }
  0x42   :  { %306 = vperm.xlu1 %1483, %v1834_v23   ;;  %301 = vperm.xlu0 %1482, %v1839_v24  }
  0x49   :  { %326 = vperm.xlu2 %1484, %v1847_v25  }
  0x4a   :  { %321 = vperm.xlu1 %1483, %v1852_v26   ;;  %316 = vperm.xlu0 %1482, %v1857_v27  }
  0x51   :  { %341 = vperm.xlu2 %1484, %v1865_v28  }
  0x52   :  { %336 = vperm.xlu1 %1483, %v1870_v29   ;;  %331 = vperm.xlu0 %1482, %v1875_v30  }
  0x59   :  { %580 = vperm.xlu2 %1484, %v162_v31   ;;  %v183_v31 = vadd.f32 1.0, %v1839_v24 }
  0x5a   :  { %351 = vperm.xlu1 %1483, %v1884_v32   ;;  %346 = vperm.xlu0 %1482, %v1889_v33  }
  0x61   :  { %595 = vperm.xlu2 %1484, %v165_v35  }
  0x62   :  { %590 = vperm.xlu1 %1483, %v164_v34   ;;  %585 = vperm.xlu0 %1482, %v163_v36   ;;  %v181_v34 = vadd.f32 1.0, %v1816_v20 }
  0x63   :  { %v1896_v37 = vpop.permute.xlu2 %216 }
  0x69   :  { %610 = vperm.xlu2 %1484, %v168_v39   ;;  %v185_v39 = vadd.f32 1.0, %v1829_v22 }
  0x6a   :  { %605 = vperm.xlu1 %1483, %v167_v38   ;;  %600 = vperm.xlu0 %1482, %v166_v40   ;;  %v186_v40 = vadd.f32 1.0, %v1857_v27 }
  0x6b   :  { %v1901_v41 = vpop.permute.xlu2 %221 }
  0x71   :  { %625 = vperm.xlu2 %1484, %v171_v43  }
  0x72   :  { %620 = vperm.xlu1 %1483, %v170_v42   ;;  %615 = vperm.xlu0 %1482, %v169_v44   ;;  %v184_v42 = vadd.f32 1.0, %v1834_v23 }
  0x73   :  { %v1906_v45 = vpop.permute.xlu2 %236 }
  0x79   :  { %640 = vperm.xlu2 %1484, %v174_v47   ;;  %v188_v47 = vadd.f32 1.0, %v1847_v25 }
  0x7a   :  { %635 = vperm.xlu1 %1483, %v173_v46   ;;  %630 = vperm.xlu0 %1482, %v172_v48   ;;  %v189_v48 = vadd.f32 1.0, %v1875_v30 }
  0x7b   :  { %v1911_v49 = vpop.permute.xlu2 %251 }
  0x7c   :  { %v1913_v50 = vpop.permute.xlu1 %206  ;;  %v1915_v51 = vpop.permute.xlu0 %196 }
  0x81   :  { %655 = vperm.xlu2 %1484, %v177_v53  }
  0x82   :  { %650 = vperm.xlu1 %1483, %v176_v52   ;;  %645 = vperm.xlu0 %1482, %v175_v54   ;;  %v187_v52 = vadd.f32 1.0, %v1852_v26 }
  0x83   :  { %v1920_v55 = vpop.permute.xlu2 %266 }
  0x84   :  { %v1922_v56 = vpop.permute.xlu1 %211  ;;  %v1924_v57 = vpop.permute.xlu0 %201 }
  0x89   :  { %670 = vperm.xlu2 %1484, %v180_v59   ;;  %v191_v59 = vadd.f32 1.0, %v1865_v28 }
  0x8a   :  { %665 = vperm.xlu1 %1483, %v179_v58   ;;  %660 = vperm.xlu0 %1482, %v178_v60   ;;  %v192_v60 = vadd.f32 1.0, %v1889_v33 }
  0x8b   :  { %v1929_v61 = vpop.permute.xlu2 %281 }
  0x8c   :  { %v1931_v62 = vpop.permute.xlu1 %231  ;;  %v1933_v63 = vpop.permute.xlu0 %226 }
  0x91   :  { %685 = vperm.xlu2 %1484, %v183_v31  }
  0x92   :  { %680 = vperm.xlu1 %1483, %v182_v0   ;;  %675 = vperm.xlu0 %1482, %v181_v34   ;;  %v190_v0 = vadd.f32 1.0, %v1870_v29 }
  0x93   :  { %v1938_v35 = vpop.permute.xlu2 %296 }
  0x94   :  { %v1940_v36 = vpop.permute.xlu1 %246  ;;  %v1942_v38 = vpop.permute.xlu0 %241 }
  0x99   :  { %700 = vperm.xlu2 %1484, %v186_v40   ;;  %v1444_v40 = vadd.f32 -1.0, %v1731_v6 }
  0x9a   :  { %695 = vperm.xlu1 %1483, %v185_v39   ;;  %690 = vperm.xlu0 %1482, %v184_v42   ;;  %v1443_v42 = vadd.f32 -1.0, %v1713_v3 }
  0x9b   :  { %v1947_v43 = vpop.permute.xlu2 %311 }
  0x9c   :  { %3388 = vst [vmem:[#allocation13_spill] sm:$0xff] %v1947_v43  ;;  %v1949_v44 = vpop.permute.xlu1 %261  ;;  %v1951_v46 = vpop.permute.xlu0 %256  ;;  %v1449_v43 = vadd.f32 -1.0, %v1749_v9 }
  0xa1   :  { %715 = vperm.xlu2 %1484, %v189_v48  }
  0xa2   :  { %710 = vperm.xlu1 %1483, %v188_v47   ;;  %705 = vperm.xlu0 %1482, %v187_v52   ;;  %v193_v47 = vadd.f32 1.0, %v1884_v32 }
  0xa3   :  { %v1956_v53 = vpop.permute.xlu2 %326 }
  0xa4   :  { %3389 = vst [vmem:[#allocation14_spill] sm:$0xff] %v1956_v53  ;;  %v1958_v54 = vpop.permute.xlu1 %276  ;;  %v1960_v58 = vpop.permute.xlu0 %271 }
  0xa5   :  { %3390 = vst [vmem:[#allocation15_spill] sm:$0xff] %v1960_v58 }
  0xa9   :  { %730 = vperm.xlu2 %1484, %v192_v60   ;;  %v1447_v60 = vadd.f32 -1.0, %v1703_v1 }
  0xaa   :  { %725 = vperm.xlu1 %1483, %v191_v59   ;;  %720 = vperm.xlu0 %1482, %v190_v0   ;;  %v1446_v0 = vadd.f32 -1.0, %v1726_v5 }
  0xab   :  { %v1965_v31 = vpop.permute.xlu2 %341 }
  0xac   :  { %3391 = vst [vmem:[#allocation16_spill] sm:$0xff] %v1965_v31  ;;  %v1967_v34 = vpop.permute.xlu1 %291  ;;  %v1969_v39 = vpop.permute.xlu0 %286  ;;  %v1445_v31 = vadd.f32 -1.0, %v1708_v2 }
  0xad   :  { %3392 = vst [vmem:[#allocation17_spill] sm:$0xff] %v1969_v39 }
  0xb1   :  { %777 = vperm.xlu2 %1484, %v1444_v40  }
  0xb2   :  { %772 = vperm.xlu1 %1483, %v1443_v42   ;;  %735 = vperm.xlu0 %1482, %v193_v47   ;;  %v1450_v47 = vadd.f32 -1.0, %v1744_v8 }
  0xb3   :  { %v1976_v52 = vpop.permute.xlu2 %580 }
  0xb4   :  { %v1974_v48 = vpop.permute.xlu1 %306  ;;  %v1978_v59 = vpop.permute.xlu0 %301 }
  0xb5   :  { %3393 = vst [vmem:[#allocation18_spill] sm:$0xff] %v1978_v59  ;;  %v1448_v59 = vadd.f32 -1.0, %v1721_v4 }
  0xb9   :  { %792 = vperm.xlu2 %1484, %v1447_v60  }
  0xba   :  { %787 = vperm.xlu1 %1483, %v1446_v0   ;;  %782 = vperm.xlu0 %1482, %v1445_v31   ;;  %v1453_v0 = vadd.f32 -1.0, %v1762_v11 }
  0xbb   :  { %v1985_v40 = vpop.permute.xlu2 %595 }
  0xbc   :  { %v1983_v53 = vpop.permute.xlu1 %321  ;;  %3394 = vst [vmem:[#allocation19_spill] sm:$0xff] %v1985_v40  ;;  %v1987_v42 = vpop.permute.xlu0 %316  ;;  %v1452_v40 = vadd.f32 -1.0, %v1767_v12 }
  0xbd   :  { %3395 = vst [vmem:[#allocation20_spill] sm:$0xff] %v1987_v42  ;;  %v1451_v42 = vadd.f32 -1.0, %v1739_v7 }
  0xc1   :  { %807 = vperm.xlu2 %1484, %v1450_v47  }
  0xc2   :  { %802 = vperm.xlu1 %1483, %v1449_v43   ;;  %797 = vperm.xlu0 %1482, %v1448_v59   ;;  %v1456_v59 = vadd.f32 -1.0, %v1780_v14 }
  0xc3   :  { %v1994_v60 = vpop.permute.xlu2 %610 }
  0xc4   :  { %v1992_v39 = vpop.permute.xlu1 %336  ;;  %3397 = vst [vmem:[#allocation22_spill] sm:$0xff] %v1994_v60  ;;  %v1996_v31 = vpop.permute.xlu0 %331  ;;  %v1455_v60 = vadd.f32 -1.0, %v1785_v15 }
  0xc5   :  { %3396 = vst [vmem:[#allocation21_spill] sm:$0xff] %v1992_v39 }
  0xc6   :  { %3398 = vst [vmem:[#allocation23_spill] sm:$0xff] %v1996_v31  ;;  %v1454_v31 = vadd.f32 -1.0, %v1757_v10 }
  0xc9   :  { %822 = vperm.xlu2 %1484, %v1453_v0  }
  0xca   :  { %817 = vperm.xlu1 %1483, %v1452_v40   ;;  %812 = vperm.xlu0 %1482, %v1451_v42   ;;  %v1459_v42 = vadd.f32 -1.0, %v1798_v17 }
  0xcb   :  { %v2003_v47 = vpop.permute.xlu2 %625 }
  0xcc   :  { %v2001_v58 = vpop.permute.xlu1 %351  ;;  %3400 = vst [vmem:[#allocation25_spill] sm:$0xff] %v2003_v47  ;;  %v2005_v43 = vpop.permute.xlu0 %346  ;;  %v1458_v47 = vadd.f32 -1.0, %v1803_v18 }
  0xcd   :  { %3399 = vst [vmem:[#allocation24_spill] sm:$0xff] %v2001_v58 }
  0xce   :  { %3401 = vst [vmem:[#allocation26_spill] sm:$0xff] %v2005_v43  ;;  %v1457_v43 = vadd.f32 -1.0, %v1775_v13 }
  0xd1   :  { %837 = vperm.xlu2 %1484, %v1456_v59  }
  0xd2   :  { %832 = vperm.xlu1 %1483, %v1455_v60   ;;  %827 = vperm.xlu0 %1482, %v1454_v31   ;;  %v1462_v31 = vadd.f32 -1.0, %v1816_v20  ;;  %v1470_v20 = vadd.f32 -1.0, %v1875_v30 }
  0xd3   :  { %v2012_v0 = vpop.permute.xlu2 %640 }
  0xd4   :  { %v2010_v39 = vpop.permute.xlu1 %590  ;;  %3403 = vst [vmem:[#allocation28_spill] sm:$0xff] %v2012_v0  ;;  %v2014_v40 = vpop.permute.xlu0 %585  ;;  %v1461_v0 = vadd.f32 -1.0, %v1821_v21  ;;  %v2040_v21 = vld [vmem:[%s3264_s0 + $0x8] sm:$0xff] }
  0xd5   :  { %3402 = vst [vmem:[#allocation27_spill] sm:$0xff] %v2010_v39  ;;  %v1460_v39 = vadd.f32 -1.0, %v1793_v16  ;;  %vm739_vm0 = vcmp.le.f32.partialorder %v2040_v21, %v2014_v40 }
  0xd9   :  { %852 = vperm.xlu2 %1484, %v1459_v42  }
  0xda   :  { %847 = vperm.xlu1 %1483, %v1458_v47   ;;  %842 = vperm.xlu0 %1482, %v1457_v43   ;;  %v1465_v43 = vadd.f32 -1.0, %v1834_v23 }
  0xdb   :  { %v2021_v59 = vpop.permute.xlu2 %655 }
  0xdc   :  { %v2019_v58 = vpop.permute.xlu1 %605  ;;  %3405 = vst [vmem:[#allocation30_spill] sm:$0xff] %v2021_v59  ;;  %v2023_v60 = vpop.permute.xlu0 %600  ;;  %v1464_v59 = vadd.f32 -1.0, %v1839_v24  ;;  %v1468_v24 = vadd.f32 -1.0, %v1852_v26 }
  0xdd   :  { %3404 = vst [vmem:[#allocation29_spill] sm:$0xff] %v2019_v58  ;;  %v1463_v58 = vadd.f32 -1.0, %v1811_v19  ;;  %v1467_v19 = vadd.f32 -1.0, %v1857_v27 }
  0xe1   :  { %867 = vperm.xlu2 %1484, %v1462_v31  }
  0xe2   :  { %862 = vperm.xlu1 %1483, %v1461_v0   ;;  %857 = vperm.xlu0 %1482, %v1460_v39   ;;  %v355_v39 = vsub.f32 %v2040_v21, %v1924_v57 }
  0xe3   :  { %v2030_v42 = vpop.permute.xlu2 %670 }
  0xe4   :  { %v2028_v18 = vpop.permute.xlu1 %620  ;;  %3407 = vst [vmem:[#allocation32_spill] sm:$0xff] %v2030_v42  ;;  %v2032_v47 = vpop.permute.xlu0 %615  ;;  %v2055_v42 = vld [vmem:[%s3264_s0 + $0x20] sm:$0xff] }
  0xe5   :  { %3406 = vst [vmem:[#allocation31_spill] sm:$0xff] %v2028_v18  ;;  %v358_v57 = vsub.f32 %v2055_v42, %v1896_v37  ;;  %v1471_v18 = vadd.f32 -1.0, %v1870_v29  ;;  %v2072_v37 = vld [vmem:[%s3264_s0 + $0x38] sm:$0xff]  ;;  %vm742_vm3 = vcmp.le.f32.partialorder %v2055_v42, %v2023_v60 }
  0xe6   :  { %vm745_vm6 = vcmp.le.f32.partialorder %v2072_v37, %v2032_v47 }
  0xe9   :  { %882 = vperm.xlu2 %1484, %v1465_v43  }
  0xea   :  { %877 = vperm.xlu1 %1483, %v1464_v59   ;;  %872 = vperm.xlu0 %1482, %v1463_v58   ;;  %v1466_v58 = vadd.f32 -1.0, %v1829_v22  ;;  %v387_v59 = vmul.f32 %v355_v39, %v355_v39  ;;  %v1469_v22 = vadd.f32 -1.0, %v1847_v25 }
  0xeb   :  { %v2046_v31 = vpop.permute.xlu2 %685 }
  0xec   :  { %v2044_v0 = vpop.permute.xlu1 %635  ;;  %3409 = vst [vmem:[#allocation34_spill] sm:$0xff] %v2046_v31  ;;  %v2048_v23 = vpop.permute.xlu0 %630  ;;  %v419_v43 = vmul.f32 -4.5, %v387_v59  ;;  %v1474_v59 = vadd.f32 -1.0, %v1884_v32  ;;  %v2098_v32 = vld [vmem:[%s3264_s0 + $0x28] sm:$0xff] }
  0xed   :  { %3408 = vst [vmem:[#allocation33_spill] sm:$0xff] %v2044_v0  ;;  %v390_v0 = vmul.f32 %v358_v57, %v358_v57  ;;  %v1473_v57 = vadd.f32 -1.0, %v1889_v33 }
  0xee   :  { %v452_v39 = vmul.f32 1.442695, %v419_v43  ;;  %v2093_v43 = vld [vmem:[%s3264_s0] sm:$0xff] }
  0xef   :  { %vm738_vm12 = vcmp.le.f32.partialorder %v2093_v43, %v1976_v52 }
  0xf0   :  { %1488 = vpow2.f32 %v452_v39 }
  0xf1   :  { %897 = vperm.xlu2 %1484, %v1468_v24   ;;  %v422_v24 = vmul.f32 -4.5, %v390_v0  ;;  %v1472_v0 = vadd.f32 -1.0, %v1865_v28 }
  0xf2   :  { %892 = vperm.xlu1 %1483, %v1467_v19   ;;  %887 = vperm.xlu0 %1482, %v1466_v58   ;;  %v361_v19 = vsub.f32 %v2072_v37, %v1931_v62 }
  0xf3   :  { %v2062_v26 = vpop.permute.xlu2 %700  ;;  %v458_v25 = vmul.f32 1.442695, %v422_v24  ;;  %v2109_v24 = vld [vmem:[%s3264_s0 + $0x10] sm:$0xff] }
  0xf4   :  { %v2060_v31 = vpop.permute.xlu1 %650  ;;  %3411 = vst [vmem:[#allocation36_spill] sm:$0xff] %v2062_v26  ;;  %v2064_v27 = vpop.permute.xlu0 %645 }
  0xf5   :  { %3410 = vst [vmem:[#allocation35_spill] sm:$0xff] %v2060_v31  ;;  %1490 = vpow2.f32 %v458_v25  ;;  %v1669_v31 = vmov 1  }
  0xf6   :  { %v1489_v62 = vpop.eup %1488 }
  0xf7   :  { %v515_v25 = vmul.f32 1.1968268, %v1489_v62 }
  0xf9   :  { %912 = vperm.xlu2 %1484, %v1471_v18   ;;  %v393_v18 = vmul.f32 %v361_v19, %v361_v19  ;;  %v354_v19 = vsub.f32 %v2093_v43, %v1915_v51  ;;  %v2127_v51 = vld [vmem:[%s3264_s0 + $0x68] sm:$0xff] }
  0xfa   :  { %907 = vperm.xlu1 %1483, %v1470_v20   ;;  %902 = vperm.xlu0 %1482, %v1469_v22   ;;  %v2088_v20 = vld [vmem:[%s3264_s0 + $0x50] sm:$0xff]  ;;  %vm751_vm15 = vcmp.le.f32.partialorder %v2127_v51, %v2064_v27  ;;  %v2375_v27 = vld [vmem:[#allocation2 + $0x80] sm:$0xff] }
  0xfb   :  { %v2078_v29 = vpop.permute.xlu2 %715  ;;  %v425_v28 = vmul.f32 -4.5, %v393_v18  ;;  %v364_v33 = vsub.f32 %v2088_v20, %v1940_v36  ;;  %v2120_v36 = vld [vmem:[%s3264_s0 + $0x18] sm:$0xff]  ;;  %v1491_v18 = vpop.eup %1490  ;;  %v386_v62 = vmul.f32 %v354_v19, %v354_v19  ;;  %vm748_vm9 = vcmp.le.f32.partialorder %v2088_v20, %v2048_v23  ;;  %3451 = vst [vmem:[#allocation60_spill] sm:$0xff] %v2375_v27 }
  0xfc   :  { %v2076_v58 = vpop.permute.xlu1 %665  ;;  %3413 = vst [vmem:[#allocation38_spill] sm:$0xff] %v2078_v29  ;;  %v2080_v30 = vpop.permute.xlu0 %660  ;;  %v3438_v23 = vmov 0 }
  0xfd   :  { %3412 = vst [vmem:[#allocation37_spill] sm:$0xff] %v2076_v58  ;;  %v464_v29 = vmul.f32 1.442695, %v425_v28  ;;  %v396_v26 = vmul.f32 %v364_v33, %v364_v33  ;;  %v357_v58 = vsub.f32 %v2120_v36, %v1922_v56  ;;  %v2137_v28 = vld [vmem:[%s3264_s0 + $0x40] sm:$0xff] }
  0xff   :  { %1492 = vpow2.f32 %v464_v29  ;;  %v428_v19 = vmul.f32 -4.5, %v396_v26 }
 0x101   :  { %927 = vperm.xlu2 %1484, %v1474_v59  }
 0x102   :  { %922 = vperm.xlu1 %1483, %v1473_v57   ;;  %917 = vperm.xlu0 %1482, %v1472_v0   ;;  %v359_v57 = vsub.f32 %v2098_v32, %v1901_v41  ;;  %v67_v0 = vld [vmem:[#allocation2 + $0x8] sm:$0xff] }
 0x103   :  { %v2104_v39 = vpop.permute.xlu2 %730 }
 0x104   :  { %v2102_v22 = vpop.permute.xlu1 %680  ;;  %3415 = vst [vmem:[#allocation40_spill] sm:$0xff] %v2104_v39  ;;  %v2113_v59 = vpop.permute.xlu0 %675  ;;  %v356_v39 = vsub.f32 %v2109_v24, %v1913_v50  ;;  %v391_v41 = vmul.f32 %v359_v57, %v359_v57  ;;  %v367_v50 = vsub.f32 %v2127_v51, %v1949_v44  ;;  %v70_v44 = vld [vmem:[#allocation2 + $0x20] sm:$0xff] }
 0x105   :  { %3414 = vst [vmem:[#allocation39_spill] sm:$0xff] %v2102_v22  ;;  %v547_v22 = vsub.f32 %v67_v0, %v515_v25 }
 0x106   :  { %3416 = vst [vmem:[#allocation41_spill] sm:$0xff] %v2113_v59  ;;  %v518_v59 = vmul.f32 1.1968268, %v1491_v18  ;;  %v388_v33 = vmul.f32 %v356_v39, %v356_v39  ;;  %v423_v26 = vmul.f32 -4.5, %v391_v41  ;;  %v362_v39 = vsub.f32 %v2137_v28, %v1906_v45  ;;  %v2175_v45 = vld [vmem:[%s3264_s0 + $0x80] sm:$0xff] }
 0x107   :  { %v2151_v29 = vmul.f32 %v547_v22, %v547_v22  ;;  %v399_v57 = vmul.f32 %v367_v50, %v367_v50  ;;  %v2170_v22 = vld [vmem:[%s3264_s0 + $0x58] sm:$0xff] }
 0x108   :  { %v550_v0 = vsub.f32 %v70_v44, %v518_v59  ;;  %v420_v18 = vmul.f32 -4.5, %v388_v33  ;;  %v1493_v59 = vpop.eup %1492  ;;  %v460_v41 = vmul.f32 1.442695, %v423_v26  ;;  %v394_v33 = vmul.f32 %v362_v39, %v362_v39 }
 0x109   :  { %1487 = vset.pattern.permute.xlu2 %v1669_v31  ;;  %3418 = vst [vmem:[#allocation43_spill] sm:$0xff] %v2151_v29  ;;  %v431_v40 = vmul.f32 -4.5, %v399_v57 }
 0x10a   :  { %1486 = vset.pattern.permute.xlu1 %v1669_v31  ;;  %1485 = vset.pattern.permute.xlu0 %v1669_v31  ;;  %v418_v31 = vmul.f32 -4.5, %v386_v62  ;;  %v454_v29 = vmul.f32 1.442695, %v420_v18 }
 0x10b   :  { %1067 = vperm.xlu2 %1487, %v1708_v2   ;;  %1059 = vperm.xlu0 %1485, %v1713_v3   ;;  %v2143_v25 = vpop.permute.xlu2 %777  ;;  %v389_v3 = vmul.f32 %v357_v58, %v357_v58  ;;  %v470_v58 = vmul.f32 1.442695, %v428_v19  ;;  %v2180_v19 = vmul.f32 %v550_v0, %v550_v0  ;;  %v476_v57 = vmul.f32 1.442695, %v431_v40 }
 0x10c   :  { %1063 = vperm.xlu1 %1486, %v1731_v6   ;;  %v2141_v56 = vpop.permute.xlu1 %695  ;;  %3417 = vst [vmem:[#allocation42_spill] sm:$0xff] %v2143_v25  ;;  %v2147_v2 = vpop.permute.xlu0 %690  ;;  %vm931_vm1 = vcmp.ge.f32.partialorder %v2040_v21, %v2143_v25  ;;  %v3419_v6 = vmov 0  ;;  %v2165_v21 = vld [vmem:[%s3264_s0 + $0x30] sm:$0xff]  ;;  %v450_v62 = vmul.f32 1.442695, %v418_v31  ;;  %v365_v31 = vsub.f32 %v2170_v22, %v1911_v49 }
 0x10d   :  { %vm2153_vm2 = vmand %vm739_vm0, %vm931_vm1  ;;  %v421_v50 = vmul.f32 -4.5, %v389_v3  ;;  %v360_v44 = vsub.f32 %v2165_v21, %v1933_v63  ;;  %3422 = vst [vmem:[#allocation45_spill] sm:$0xff] %v2180_v19  ;;  %1494 = vpow2.f32 %v470_v58  ;;  %v2215_v58 = vld [vmem:[%s3264_s0 + $0x98] sm:$0xff] }
 0x10e   :  { %v3420_v6 = vsel %vm2153_vm2, 4294967295, %v3419_v6  ;;  %1496 = vpow2.f32 %v450_v62  ;;  %v397_v0 = vmul.f32 %v365_v31, %v365_v31 }
 0x10f   :  { %3421 = vst [vmem:[#allocation44_spill] sm:$0xff] %v3420_v6  ;;  %v370_v6 = vsub.f32 %v2175_v45, %v1958_v54  ;;  %v456_v49 = vmul.f32 1.442695, %v421_v50  ;;  %v3424_v54 = vmov 0  ;;  %v392_v39 = vmul.f32 %v360_v44, %v360_v44 }
 0x110   :  { %1498 = vpow2.f32 %v460_v41  ;;  %v2223_v41 = vld [vmem:[%s3264_s0 + $0x48] sm:$0xff] }
 0x111   :  { %v402_v18 = vmul.f32 %v370_v6, %v370_v6  ;;  %1500 = vpow2.f32 %v454_v29  ;;  %v424_v44 = vmul.f32 -4.5, %v392_v39  ;;  %3428 = vst [vmem:[#allocation49_spill] sm:$0xff] %v2223_v41  ;;  %v373_v6 = vsub.f32 %v2215_v58, %v1967_v34 }
 0x112   :  { %1502 = vpow2.f32 %v456_v49 }
 0x113   :  { %1075 = vperm.xlu2 %1487, %v1703_v1   ;;  %1079 = vperm.xlu0 %1485, %v1721_v4   ;;  %v2190_v63 = vpop.permute.xlu2 %792  ;;  %v521_v1 = vmul.f32 1.1968268, %v1493_v59  ;;  %v2202_v4 = vld [vmem:[#allocation2 + $0x38] sm:$0xff]  ;;  %v1495_v59 = vpop.eup %1494  ;;  %1504 = vpow2.f32 %v476_v57  ;;  %v434_v31 = vmul.f32 -4.5, %v402_v18  ;;  %v2253_v18 = vld [vmem:[#allocation2 + $0x50] sm:$0xff] }
 0x114   :  { %1071 = vperm.xlu1 %1486, %v1726_v5   ;;  %v2188_v26 = vpop.permute.xlu1 %710  ;;  %3423 = vst [vmem:[#allocation46_spill] sm:$0xff] %v2190_v63  ;;  %v2194_v3 = vpop.permute.xlu0 %705  ;;  %vm934_vm4 = vcmp.ge.f32.partialorder %v2055_v42, %v2190_v63  ;;  %v2207_v5 = vld [vmem:[%s3264_s0 + $0x70] sm:$0xff]  ;;  %v426_v42 = vmul.f32 -4.5, %v394_v33  ;;  %v429_v33 = vmul.f32 -4.5, %v397_v0  ;;  %v524_v39 = vmul.f32 1.1968268, %v1495_v59 }
 0x115   :  { %vm2198_vm5 = vmand %vm742_vm3, %vm934_vm4  ;;  %3427 = vst [vmem:[#allocation48_spill] sm:$0xff] %v2202_v4  ;;  %v553_v62 = vsub.f32 %v2202_v4, %v521_v1  ;;  %v368_v40 = vsub.f32 %v2207_v5, %v1920_v55  ;;  %v1497_v50 = vpop.eup %1496  ;;  %v2231_v55 = vld [vmem:[%s3264_s0 + $0x88] sm:$0xff]  ;;  %v3431_v0 = vmov 0  ;;  %v462_v60 = vmul.f32 1.442695, %v424_v44 }
 0x116   :  { %v3425_v54 = vsel %vm2198_vm5, 4294967295, %v3424_v54  ;;  %v466_v29 = vmul.f32 1.442695, %v426_v42  ;;  %v1499_v57 = vpop.eup %1498  ;;  %v514_v42 = vmul.f32 1.1968268, %v1497_v50  ;;  %3434 = vst [vmem:[#allocation53_spill] sm:$0xff] %v2253_v18  ;;  %v371_v59 = vsub.f32 %v2231_v55, %v1929_v61 }
 0x117   :  { %3426 = vst [vmem:[#allocation47_spill] sm:$0xff] %v3425_v54  ;;  %v2245_v34 = vmul.f32 %v553_v62, %v553_v62  ;;  %v1501_v47 = vpop.eup %1500  ;;  %v519_v19 = vmul.f32 1.1968268, %v1499_v57  ;;  %v472_v54 = vmul.f32 1.442695, %v429_v33  ;;  %v2270_v61 = vld [vmem:[%s3264_s0 + $0xb0] sm:$0xff]  ;;  %v556_v44 = vsub.f32 %v2253_v18, %v524_v39 }
 0x118   :  { %v1503_v50 = vpop.eup %1502  ;;  %1506 = vpow2.f32 %v466_v29  ;;  %v2277_v33 = vld [vmem:[#allocation2 + $0x10] sm:$0xff]  ;;  %v376_v39 = vsub.f32 %v2270_v61, %v1974_v48 }
 0x119   :  { %3430 = vst [vmem:[#allocation51_spill] sm:$0xff] %v2245_v34  ;;  %v1505_v4 = vpop.eup %1504  ;;  %1508 = vpow2.f32 %v462_v60  ;;  %v517_v57 = vmul.f32 1.1968268, %v1503_v50 }
 0x11a   :  { %v527_v25 = vmul.f32 1.1968268, %v1505_v4 }
 0x11b   :  { %1087 = vperm.xlu2 %1487, %v1744_v8   ;;  %1091 = vperm.xlu0 %1485, %v1739_v7   ;;  %v2237_v49 = vpop.permute.xlu2 %807  ;;  %v400_v7 = vmul.f32 %v368_v40, %v368_v40  ;;  %v2260_v40 = vld [vmem:[#allocation2] sm:$0xff] }
 0x11c   :  { %1083 = vperm.xlu1 %1486, %v1749_v9   ;;  %v2235_v1 = vpop.permute.xlu1 %725  ;;  %3429 = vst [vmem:[#allocation50_spill] sm:$0xff] %v2237_v49  ;;  %v2241_v8 = vpop.permute.xlu0 %720  ;;  %vm937_vm7 = vcmp.ge.f32.partialorder %v2072_v37, %v2237_v49  ;;  %v363_v9 = vsub.f32 %v2223_v41, %v1942_v38  ;;  %v405_v37 = vmul.f32 %v373_v6, %v373_v6  ;;  %v2265_v38 = vld [vmem:[%s3264_s0 + $0x60] sm:$0xff]  ;;  %v482_v49 = vmul.f32 1.442695, %v434_v31 }
 0x11d   :  { %vm2249_vm8 = vmand %vm745_vm6, %vm937_vm7  ;;  %v516_v6 = vmul.f32 1.1968268, %v1501_v47  ;;  %v432_v62 = vmul.f32 -4.5, %v400_v7  ;;  %v546_v29 = vsub.f32 %v2260_v40, %v514_v42  ;;  %v366_v31 = vsub.f32 %v2265_v38, %v1951_v46  ;;  %v2310_v7 = vld [vmem:[#allocation2 + $0x28] sm:$0xff] }
 0x11e   :  { %v3432_v0 = vsel %vm2249_vm8, 4294967295, %v3431_v0  ;;  %v395_v34 = vmul.f32 %v363_v9, %v363_v9  ;;  %v437_v63 = vmul.f32 -4.5, %v405_v37  ;;  %1510 = vpow2.f32 %v482_v49  ;;  %v1507_v48 = vpop.eup %1506  ;;  %v2327_v37 = vld [vmem:[%s3264_s0 + $0xc8] sm:$0xff] }
 0x11f   :  { %3433 = vst [vmem:[#allocation52_spill] sm:$0xff] %v3432_v0  ;;  %v403_v0 = vmul.f32 %v371_v59, %v371_v59  ;;  %v2295_v46 = vmul.f32 %v556_v44, %v556_v44  ;;  %v2308_v49 = vmul.f32 %v546_v29, %v546_v29  ;;  %v398_v9 = vmul.f32 %v366_v31, %v366_v31  ;;  %v2337_v31 = vld [vmem:[%s3264_s0 + $0x78] sm:$0xff] }
 0x120   :  { %v427_v4 = vmul.f32 -4.5, %v395_v34  ;;  %v488_v47 = vmul.f32 1.442695, %v437_v63  ;;  %v408_v34 = vmul.f32 %v376_v39, %v376_v39  ;;  %v522_v29 = vmul.f32 1.1968268, %v1507_v48  ;;  %3443 = vst [vmem:[#allocation58_spill] sm:$0xff] %v2337_v31 }
 0x121   :  { %3436 = vst [vmem:[#allocation55_spill] sm:$0xff] %v2295_v46  ;;  %1512 = vpow2.f32 %v472_v54  ;;  %v551_v39 = vsub.f32 %v2310_v7, %v519_v19  ;;  %v478_v46 = vmul.f32 1.442695, %v432_v62  ;;  %v379_v54 = vsub.f32 %v2327_v37, %v1983_v53  ;;  %v3444_v48 = vld [vmem:[#allocation15_spill] sm:$0xff]  ;;  %v1569_v59 = vld [vmem:[%s3264_s0 + $0x18] sm:$0xff] }
 0x122   :  { %1514 = vpow2.f32 %v488_v47  ;;  %v369_v63 = vsub.f32 %v2337_v31, %v3444_v48  ;;  %v440_v19 = vmul.f32 -4.5, %v408_v34  ;;  %v3448_v53 = vmov 0  ;;  %v2386_v34 = vld [vmem:[#allocation2 + $0x40] sm:$0xff] }
 0x123   :  { %1099 = vperm.xlu2 %1487, %v1762_v11   ;;  %1103 = vperm.xlu0 %1485, %v1757_v10   ;;  %v2283_v42 = vpop.permute.xlu2 %822  ;;  %v2297_v10 = vld [vmem:[#allocation2 + $0x68] sm:$0xff] }
 0x124   :  { %1095 = vperm.xlu1 %1486, %v1767_v12   ;;  %3435 = vst [vmem:[#allocation54_spill] sm:$0xff] %v2283_v42  ;;  %v2285_v60 = vpop.permute.xlu1 %772  ;;  %v2289_v11 = vpop.permute.xlu0 %735  ;;  %vm940_vm10 = vcmp.ge.f32.partialorder %v2088_v20, %v2283_v42  ;;  %v2299_v12 = vld [vmem:[#allocation2 + $0x18] sm:$0xff]  ;;  %v548_v20 = vsub.f32 %v2277_v33, %v516_v6  ;;  %v559_v50 = vsub.f32 %v2297_v10, %v527_v25  ;;  %v468_v42 = vmul.f32 1.442695, %v427_v4 }
 0x125   :  { %vm930_vm11 = vcmp.ge.f32.partialorder %v2093_v43, %v2285_v60  ;;  %3437 = vst [vmem:[#allocation56_spill] sm:$0xff] %v2297_v10  ;;  %vm2303_vm13 = vmand %vm748_vm9, %vm940_vm10  ;;  %v2322_v43 = vld [vmem:[%s3264_s0 + $0xa0] sm:$0xff]  ;;  %v549_v44 = vsub.f32 %v2299_v12, %v517_v57  ;;  %v1509_v6 = vpop.eup %1508  ;;  %v430_v57 = vmul.f32 -4.5, %v398_v9 }
 0x126   :  { %v3439_v23 = vsel %vm2303_vm13, 4294967295, %v3438_v23  ;;  %vm2312_vm14 = vmand %vm738_vm12, %vm930_vm11  ;;  %v1511_v52 = vpop.eup %1510  ;;  %v2340_v18 = vmul.f32 %v548_v20, %v548_v20  ;;  %v374_v25 = vsub.f32 %v2322_v43, %v1938_v35  ;;  %v2355_v35 = vmul.f32 %v559_v50, %v559_v50  ;;  %v2388_v50 = vld [vmem:[#allocation2 + $0x30] sm:$0xff] }
 0x127   :  { %3440 = vst [vmem:[#allocation57_spill] sm:$0xff] %v3439_v23  ;;  %v435_v23 = vmul.f32 -4.5, %v403_v0  ;;  %v2357_v4 = vmul.f32 %v549_v44, %v549_v44  ;;  %v530_v20 = vmul.f32 1.1968268, %v1511_v52  ;;  %1516 = vpow2.f32 %v468_v42  ;;  %v1513_v9 = vpop.eup %1512  ;;  %v3452_v52 = vld [vmem:[#allocation19_spill] sm:$0xff]  ;;  %v3615_v42 = vld [vmem:[#allocation46_spill] sm:$0xff] }
 0x128   :  { %3446 = vst [vmem:[#allocation59_spill] sm:$0xff] %v2355_v35  ;;  %v474_v47 = vmul.f32 1.442695, %v430_v57  ;;  %vm741_vm7 = vcmp.le.f32.partialorder %v2120_v36, %v3452_v52  ;;  %v401_v44 = vmul.f32 %v369_v63, %v369_v63  ;;  %v1515_v48 = vpop.eup %1514  ;;  %1518 = vpow2.f32 %v478_v46 }
 0x129   :  { %3455 = vst [vmem:[#allocation19_spill] sm:$0xff] %v2386_v34  ;;  %v2409_v52 = vmul.f32 %v551_v39, %v551_v39  ;;  %v484_v35 = vmul.f32 1.442695, %v435_v23  ;;  %v406_v46 = vmul.f32 %v374_v25, %v374_v25  ;;  %v3459_v39 = vld [vmem:[#allocation21_spill] sm:$0xff]  ;;  %v3460_v23 = vld [vmem:[#allocation11_spill] sm:$0xff]  ;;  %vm754_vm11 = vcmp.le.f32.partialorder %v2175_v45, %v2080_v30 }
 0x12a   :  { %3456 = vst [vmem:[#allocation61_spill] sm:$0xff] %v2388_v50  ;;  %1520 = vpow2.f32 %v474_v47  ;;  %v3467_v30 = vmov 0 }
 0x12b   :  { %1111 = vperm.xlu2 %1487, %v1780_v14   ;;  %1115 = vperm.xlu0 %1485, %v1775_v13   ;;  %v2351_v0 = vpop.permute.xlu2 %837  ;;  %v520_v13 = vmul.f32 1.1968268, %v1509_v6  ;;  %v494_v6 = vmul.f32 1.442695, %v440_v19  ;;  %v525_v19 = vmul.f32 1.1968268, %v1513_v9 }
 0x12c   :  { %1107 = vperm.xlu1 %1486, %v1785_v15   ;;  %3445 = vst [vmem:[#allocation15_spill] sm:$0xff] %v2351_v0  ;;  %v2353_v62 = vpop.permute.xlu1 %787  ;;  %v2361_v14 = vpop.permute.xlu0 %782  ;;  %vm943_vm0 = vcmp.ge.f32.partialorder %v2127_v51, %v2351_v0  ;;  %v3447_v15 = vld [vmem:[#allocation27_spill] sm:$0xff]  ;;  %v411_v51 = vmul.f32 %v379_v54, %v379_v54  ;;  %v533_v9 = vmul.f32 1.1968268, %v1515_v48  ;;  %v2451_v48 = vld [vmem:[#allocation2 + $0x58] sm:$0xff] }
 0x12d   :  { %vm933_vm1 = vcmp.ge.f32.partialorder %v2120_v36, %v2353_v62  ;;  %vm740_vm3 = vcmp.le.f32.partialorder %v2109_v24, %v3447_v15  ;;  %vm932_vm4 = vcmp.ge.f32.partialorder %v2109_v24, %v2361_v14  ;;  %vm2371_vm6 = vmand %vm751_vm15, %vm943_vm0  ;;  %v2403_v15 = vld [vmem:[%s3264_s0 + $0xe0] sm:$0xff]  ;;  %v562_v36 = vsub.f32 %v2375_v27, %v530_v20  ;;  %v1517_v63 = vpop.eup %1516  ;;  %3471 = vst [vmem:[#allocation64_spill] sm:$0xff] %v2451_v48 }
 0x12e   :  { %v3449_v53 = vsel %vm2371_vm6, 4294967295, %v3448_v53  ;;  %vm2379_vm9 = vmand %vm740_vm3, %vm932_vm4  ;;  %v554_v24 = vsub.f32 %v2386_v34, %v522_v29  ;;  %v552_v54 = vsub.f32 %v2388_v50, %v520_v13  ;;  %v443_v0 = vmul.f32 -4.5, %v411_v51  ;;  %v3465_v51 = vld [vmem:[#allocation17_spill] sm:$0xff] }
 0x12f   :  { %3450 = vst [vmem:[#allocation27_spill] sm:$0xff] %v3449_v53  ;;  %vm2393_vm10 = vmand %vm741_vm7, %vm933_vm1  ;;  %v2416_v53 = vld [vmem:[%s3264_s0 + $0x90] sm:$0xff]  ;;  %v433_v20 = vmul.f32 -4.5, %v401_v44  ;;  %1522 = vpow2.f32 %v494_v6  ;;  %v382_v29 = vsub.f32 %v2403_v15, %v3459_v39  ;;  %v3466_v6 = vld [vmem:[#allocation29_spill] sm:$0xff]  ;;  %v523_v39 = vmul.f32 1.1968268, %v1517_v63 }
 0x130   :  { %v372_v44 = vsub.f32 %v2416_v53, %v3465_v51  ;;  %vm743_vm0 = vcmp.le.f32.partialorder %v2098_v32, %v3466_v6  ;;  %v500_v51 = vmul.f32 1.442695, %v443_v0  ;;  %v3473_v6 = vld [vmem:[#allocation22_spill] sm:$0xff]  ;;  %v3477_v0 = vmov 0 }
 0x131   :  { %vm744_vm4 = vcmp.le.f32.partialorder %v2165_v21, %v3473_v6  ;;  %v2470_v63 = vld [vmem:[%s3264_s0 + $0xa8] sm:$0xff]  ;;  %v414_v27 = vmul.f32 %v382_v29, %v382_v29  ;;  %1524 = vpow2.f32 %v484_v35  ;;  %v438_v50 = vmul.f32 -4.5, %v406_v46  ;;  %v3485_v29 = vld [vmem:[#allocation12_spill] sm:$0xff]  ;;  %v1552_v46 = vld [vmem:[%s3266_s2 + $0xa0] sm:$0xff] }
 0x132   :  { %1526 = vpow2.f32 %v500_v51 }
 0x133   :  { %1123 = vperm.xlu2 %1487, %v1798_v17   ;;  %1127 = vperm.xlu0 %1485, %v1793_v16   ;;  %v2423_v25 = vpop.permute.xlu2 %852  ;;  %v2435_v17 = vmul.f32 %v562_v36, %v562_v36  ;;  %v2437_v16 = vld [vmem:[#allocation2 + $0x98] sm:$0xff]  ;;  %v1519_v36 = vpop.eup %1518  ;;  %v446_v35 = vmul.f32 -4.5, %v414_v27 }
 0x134   :  { %1119 = vperm.xlu1 %1486, %v3460_v23   ;;  %3461 = vst [vmem:[#allocation21_spill] sm:$0xff] %v2423_v25  ;;  %v2425_v13 = vpop.permute.xlu1 %802  ;;  %v2429_v47 = vpop.permute.xlu0 %797  ;;  %vm946_vm12 = vcmp.ge.f32.partialorder %v2175_v45, %v2423_v25  ;;  %v2449_v45 = vmul.f32 %v552_v54, %v552_v54  ;;  %v2456_v23 = vld [vmem:[%s3264_s0 + $0xb8] sm:$0xff]  ;;  %v480_v25 = vmul.f32 1.442695, %v433_v20  ;;  %v565_v54 = vsub.f32 %v2437_v16, %v533_v9  ;;  %v2483_v20 = vld [vmem:[#allocation2 + $0x48] sm:$0xff] }
 0x135   :  { %3462 = vst [vmem:[#allocation11_spill] sm:$0xff] %v2425_v13  ;;  %vm936_vm15 = vcmp.ge.f32.partialorder %v2165_v21, %v2425_v13  ;;  %vm935_vm1 = vcmp.ge.f32.partialorder %v2098_v32, %v2429_v47  ;;  %vm2445_vm3 = vmand %vm754_vm11, %vm946_vm12  ;;  %v3474_v32 = vmov 0  ;;  %v557_v21 = vsub.f32 %v2451_v48, %v525_v19  ;;  %v3483_v9 = vld [vmem:[#allocation18_spill] sm:$0xff] }
 0x136   :  { %3463 = vst [vmem:[#allocation62_spill] sm:$0xff] %v2435_v17  ;;  %v3468_v30 = vsel %vm2445_vm3, 4294967295, %v3467_v30  ;;  %vm2460_vm7 = vmand %vm743_vm0, %vm935_vm1  ;;  %v1521_v17 = vpop.eup %1520  ;;  %v528_v34 = vmul.f32 1.1968268, %v1519_v36  ;;  %v404_v13 = vmul.f32 %v372_v44, %v372_v44  ;;  %v555_v19 = vsub.f32 %v2483_v20, %v523_v39  ;;  %v1553_v44 = vld [vmem:[%s3266_s2 + $0x90] sm:$0xff] }
 0x137   :  { %3464 = vst [vmem:[#allocation63_spill] sm:$0xff] %v2437_v16  ;;  %v3475_v32 = vsel %vm2460_vm7, 4294967295, %v3474_v32  ;;  %vm2475_vm11 = vmand %vm744_vm4, %vm936_vm15  ;;  %v1523_v10 = vpop.eup %1522  ;;  %v375_v16 = vsub.f32 %v2470_v63, %v3483_v9  ;;  %v526_v36 = vmul.f32 1.1968268, %v1521_v17  ;;  %1528 = vpow2.f32 %v480_v25  ;;  %v3489_v17 = vld [vmem:[#allocation41_spill] sm:$0xff] }
 0x138   :  { %3469 = vst [vmem:[#allocation17_spill] sm:$0xff] %v3468_v30  ;;  %v3478_v0 = vsel %vm2475_vm11, 4294967295, %v3477_v0  ;;  %v2485_v30 = vmul.f32 %v554_v24, %v554_v24  ;;  %v2498_v24 = vld [vmem:[%s3264_s0 + $0xf8] sm:$0xff]  ;;  %v536_v39 = vmul.f32 1.1968268, %v1523_v10  ;;  %vm757_vm12 = vcmp.le.f32.partialorder %v2215_v58, %v3489_v17  ;;  %v2522_v25 = vld [vmem:[#allocation2 + $0x60] sm:$0xff]  ;;  %v1525_v48 = vpop.eup %1524 }
 0x139   :  { %3470 = vst [vmem:[#allocation29_spill] sm:$0xff] %v2449_v45  ;;  %v436_v9 = vmul.f32 -4.5, %v404_v13  ;;  %v3494_v10 = vmov 0  ;;  %v407_v17 = vmul.f32 %v375_v16, %v375_v16  ;;  %v3499_v13 = vmov 0 }
 0x13a   :  { %3472 = vst [vmem:[#allocation65_spill] sm:$0xff] %v2456_v23  ;;  %v3503_v16 = vmov 0 }
 0x13b   :  { %3476 = vst [vmem:[#allocation22_spill] sm:$0xff] %v3475_v32  ;;  %v3482_v32 = vld [vmem:[#allocation13_spill] sm:$0xff]  ;;  %1135 = vperm.xlu2 %1487, %v3485_v29   ;;  %1139 = vperm.xlu0 %1485, %v1552_v46   ;;  %v2508_v51 = vpop.permute.xlu2 %867  ;;  %v2512_v29 = vmul.f32 %v565_v54, %v565_v54  ;;  %v3492_v46 = vld [vmem:[#allocation24_spill] sm:$0xff]  ;;  %v3493_v54 = vld [vmem:[#allocation31_spill] sm:$0xff] }
 0x13c   :  { %3479 = vst [vmem:[#allocation66_spill] sm:$0xff] %v3478_v0  ;;  %v377_v6 = vsub.f32 %v2456_v23, %v3482_v32  ;;  %1131 = vperm.xlu1 %1486, %v1553_v44   ;;  %v2510_v32 = vpop.permute.xlu1 %817  ;;  %v2516_v27 = vpop.permute.xlu0 %812  ;;  %vm949_vm15 = vcmp.ge.f32.partialorder %v2215_v58, %v2508_v51  ;;  %v385_v44 = vsub.f32 %v2498_v24, %v3492_v46  ;;  %v2534_v58 = vld [vmem:[#allocation2 + $0xb0] sm:$0xff] }
 0x13d   :  { %3480 = vst [vmem:[#allocation67_spill] sm:$0xff] %v2483_v20  ;;  %vm746_vm1 = vcmp.le.f32.partialorder %v2137_v28, %v3493_v54  ;;  %vm938_vm4 = vcmp.ge.f32.partialorder %v2137_v28, %v2516_v27  ;;  %vm2530_vm3 = vmand %vm757_vm12, %vm949_vm15  ;;  %v2545_v54 = vmul.f32 %v555_v19, %v555_v19  ;;  %v2547_v28 = vld [vmem:[#allocation2 + $0x70] sm:$0xff]  ;;  %v506_v20 = vmul.f32 1.442695, %v446_v35  ;;  %v1527_v46 = vpop.eup %1526  ;;  %v2563_v19 = vld [vmem:[%s3264_s0 + $0xc0] sm:$0xff] }
 0x13e   :  { %3481 = vst [vmem:[#allocation68_spill] sm:$0xff] %v2485_v30  ;;  %v3495_v10 = vsel %vm2530_vm3, 4294967295, %v3494_v10  ;;  %vm2538_vm6 = vmand %vm746_vm1, %vm938_vm4  ;;  %vm3502_vm12 = vcmp.ge.f32.partialorder %v2223_v41, %v2510_v32  ;;  %v417_v45 = vmul.f32 %v385_v44, %v385_v44  ;;  %v2569_v0 = vmul.f32 %v557_v21, %v557_v21  ;;  %v3507_v35 = vld [vmem:[#allocation20_spill] sm:$0xff] }
 0x13f   :  { %3484 = vst [vmem:[#allocation13_spill] sm:$0xff] %v2498_v24  ;;  %v3500_v13 = vsel %vm2538_vm6, 4294967295, %v3499_v13  ;;  %v409_v30 = vmul.f32 %v377_v6, %v377_v6  ;;  %1530 = vpow2.f32 %v506_v20  ;;  %v1555_v21 = vld [vmem:[%s3266_s2 + $0xb8] sm:$0xff] }
 0x140   :  { %3486 = vst [vmem:[#allocation18_spill] sm:$0xff] %v2508_v51  ;;  %v3498_v51 = vld [vmem:[#allocation25_spill] sm:$0xff]  ;;  %v449_v44 = vmul.f32 -4.5, %v417_v45  ;;  %v3517_v45 = vmov 0 }
 0x141   :  { %3487 = vst [vmem:[#allocation12_spill] sm:$0xff] %v2510_v32  ;;  %vm747_vm0 = vcmp.le.f32.partialorder %v2223_v41, %v3498_v51  ;;  %v1529_v41 = vpop.eup %1528  ;;  %v486_v32 = vmul.f32 1.442695, %v436_v9  ;;  %v560_v51 = vsub.f32 %v2547_v28, %v528_v34  ;;  %v1556_v34 = vld [vmem:[%s3266_s2 + $0xa8] sm:$0xff] }
 0x142   :  { %3488 = vst [vmem:[#allocation69_spill] sm:$0xff] %v2512_v29  ;;  %vm2552_vm15 = vmand %vm747_vm0, %vm3502_vm12  ;;  %v568_v29 = vsub.f32 %v2534_v58, %v536_v39  ;;  %v378_v39 = vsub.f32 %v2563_v19, %v3507_v35  ;;  %vm760_vm0 = vcmp.le.f32.partialorder %v2270_v61, %v2147_v2  ;;  %v2599_v9 = vld [vmem:[#allocation2 + $0xc8] sm:$0xff]  ;;  %v3513_v2 = vmov 0 }
 0x143   :  { %3490 = vst [vmem:[#allocation41_spill] sm:$0xff] %v2516_v27  ;;  %v3504_v16 = vsel %vm2552_vm15, 4294967295, %v3503_v16  ;;  %v1554_v27 = vld [vmem:[%s3266_s2 + $0xb0] sm:$0xff]  ;;  %1151 = vperm.xlu0 %1485, %v1555_v21   ;;  %1532 = vpow2.f32 %v486_v32  ;;  %v441_v32 = vmul.f32 -4.5, %v409_v30  ;;  %v3520_v21 = vmov 0  ;;  %v2641_v30 = vld [vmem:[%s3264_s0 + $0xd8] sm:$0xff] }
 0x144   :  { %3491 = vst [vmem:[#allocation70_spill] sm:$0xff] %v2522_v25  ;;  %1147 = vperm.xlu2 %1487, %v1554_v27   ;;  %1143 = vperm.xlu1 %1486, %v1556_v34   ;;  %v2591_v20 = vpop.permute.xlu0 %827  ;;  %v2597_v27 = vmul.f32 %v568_v29, %v568_v29  ;;  %v529_v29 = vmul.f32 1.1968268, %v1529_v41  ;;  %v410_v35 = vmul.f32 %v378_v39, %v378_v39 }
 0x145   :  { %3496 = vst [vmem:[#allocation24_spill] sm:$0xff] %v3495_v10  ;;  %v558_v10 = vsub.f32 %v2522_v25, %v526_v36  ;;  %v531_v36 = vmul.f32 1.1968268, %v1525_v48  ;;  %v490_v25 = vmul.f32 1.442695, %v438_v50  ;;  %v2583_v50 = vpop.permute.xlu2 %882  ;;  %v2585_v48 = vpop.permute.xlu1 %832  ;;  %vm941_vm3 = vcmp.ge.f32.partialorder %v2170_v22, %v2591_v20 }
 0x146   :  { %3497 = vst [vmem:[#allocation31_spill] sm:$0xff] %v2534_v58  ;;  %vm952_vm1 = vcmp.ge.f32.partialorder %v2270_v61, %v2583_v50  ;;  %v2612_v61 = vld [vmem:[%s3264_s0 + $0xd0] sm:$0xff]  ;;  %v496_v39 = vmul.f32 1.442695, %v441_v32 }
 0x147   :  { %3501 = vst [vmem:[#allocation25_spill] sm:$0xff] %v3500_v13  ;;  %v439_v13 = vmul.f32 -4.5, %v407_v17  ;;  %v2587_v6 = vmul.f32 %v558_v10, %v558_v10  ;;  %v3512_v17 = vld [vmem:[#allocation33_spill] sm:$0xff]  ;;  %vm2605_vm13 = vmand %vm760_vm0, %vm952_vm1  ;;  %vm3519_vm0 = vcmp.ge.f32.partialorder %v2265_v38, %v2585_v48  ;;  %1534 = vpow2.f32 %v490_v25  ;;  %v3528_v25 = vld [vmem:[#allocation23_spill] sm:$0xff] }
 0x148   :  { %3505 = vst [vmem:[#allocation71_spill] sm:$0xff] %v3504_v16  ;;  %v539_v16 = vmul.f32 1.1968268, %v1527_v46  ;;  %vm749_vm12 = vcmp.le.f32.partialorder %v2170_v22, %v3512_v17  ;;  %v3514_v2 = vsel %vm2605_vm13, 4294967295, %v3513_v2  ;;  %v3516_v46 = vld [vmem:[#allocation28_spill] sm:$0xff]  ;;  %v3526_v22 = vld [vmem:[#allocation14_spill] sm:$0xff] }
 0x149   :  { %3506 = vst [vmem:[#allocation72_spill] sm:$0xff] %v2563_v19  ;;  %v492_v10 = vmul.f32 1.442695, %v439_v13  ;;  %vm750_vm4 = vcmp.le.f32.partialorder %v2265_v38, %v3516_v46  ;;  %vm2616_vm15 = vmand %vm749_vm12, %vm941_vm3  ;;  %v2633_v13 = vld [vmem:[#allocation2 + $0x88] sm:$0xff]  ;;  %v2636_v17 = vld [vmem:[#allocation2 + $0x78] sm:$0xff]  ;;  %v1531_v46 = vpop.eup %1530  ;;  %v380_v41 = vsub.f32 %v2612_v61, %v3526_v22  ;;  %vm763_vm3 = vcmp.le.f32.partialorder %v2327_v37, %v2194_v3 }
 0x14a   :  { %3508 = vst [vmem:[#allocation20_spill] sm:$0xff] %v2583_v50  ;;  %v3518_v45 = vsel %vm2616_vm15, 4294967295, %v3517_v45  ;;  %vm2626_vm1 = vmand %vm750_vm4, %vm3519_vm0  ;;  %v571_v34 = vsub.f32 %v2599_v9, %v539_v16  ;;  %v1557_v16 = vld [vmem:[%s3266_s2 + $0xc8] sm:$0xff]  ;;  %v561_v50 = vsub.f32 %v2636_v17, %v529_v29  ;;  %v1533_v58 = vpop.eup %1532  ;;  %v542_v22 = vmul.f32 1.1968268, %v1531_v46  ;;  %v2685_v3 = vld [vmem:[#allocation2 + $0xe0] sm:$0xff] }
 0x14b   :  { %3509 = vst [vmem:[#allocation73_spill] sm:$0xff] %v2587_v6  ;;  %v3521_v21 = vsel %vm2626_vm1, 4294967295, %v3520_v21  ;;  %1536 = vpow2.f32 %v492_v10  ;;  %v442_v6 = vmul.f32 -4.5, %v410_v35  ;;  %v412_v35 = vmul.f32 %v380_v41, %v380_v41  ;;  %v3537_v41 = vld [vmem:[#allocation30_spill] sm:$0xff] }
 0x14c   :  { %3510 = vst [vmem:[#allocation74_spill] sm:$0xff] %v2597_v27  ;;  %v512_v27 = vmul.f32 1.442695, %v449_v44  ;;  %1159 = vperm.xlu2 %1487, %v1557_v16   ;;  %v1558_v44 = vld [vmem:[%s3266_s2 + $0xd0] sm:$0xff]  ;;  %v2667_v29 = vmul.f32 %v571_v34, %v571_v34  ;;  %v2671_v32 = vpop.permute.xlu0 %842  ;;  %v3532_v34 = vmov 0  ;;  %vm753_vm12 = vcmp.le.f32.partialorder %v2337_v31, %v3537_v41  ;;  %v1560_v41 = vld [vmem:[%s3266_s2 + $0xe0] sm:$0xff] }
 0x14d   :  { %3511 = vst [vmem:[#allocation75_spill] sm:$0xff] %v2599_v9  ;;  %v2651_v9 = vmul.f32 %v560_v51, %v560_v51  ;;  %1163 = vperm.xlu0 %1485, %v1558_v44   ;;  %v1559_v51 = vld [vmem:[%s3266_s2 + $0xc0] sm:$0xff]  ;;  %v2663_v10 = vpop.permute.xlu2 %897  ;;  %v3531_v16 = vld [vmem:[#allocation35_spill] sm:$0xff]  ;;  %vm944_vm13 = vcmp.ge.f32.partialorder %v2207_v5, %v2671_v32  ;;  %v532_v46 = vmul.f32 1.1968268, %v1533_v58  ;;  %v1535_v44 = vpop.eup %1534  ;;  %v3542_v58 = vmov 0 }
 0x14e   :  { %3515 = vst [vmem:[#allocation33_spill] sm:$0xff] %v3514_v2  ;;  %v563_v2 = vsub.f32 %v2633_v13, %v531_v36  ;;  %1155 = vperm.xlu1 %1486, %v1559_v51   ;;  %v2665_v36 = vpop.permute.xlu1 %847  ;;  %vm955_vm4 = vcmp.ge.f32.partialorder %v2327_v37, %v2663_v10  ;;  %1538 = vpow2.f32 %v512_v27  ;;  %vm752_vm0 = vcmp.le.f32.partialorder %v2207_v5, %v3531_v16  ;;  %v2690_v37 = vld [vmem:[%s3264_s0 + $0xe8] sm:$0xff] }
 0x14f   :  { %3522 = vst [vmem:[#allocation28_spill] sm:$0xff] %v3521_v21  ;;  %v381_v21 = vsub.f32 %v2641_v30, %v3528_v25  ;;  %vm2681_vm1 = vmand %vm763_vm3, %vm955_vm4  ;;  %v3538_v27 = vmov 0  ;;  %v2701_v25 = vmul.f32 %v561_v50, %v561_v50  ;;  %v498_v51 = vmul.f32 1.442695, %v442_v6  ;;  %v2718_v50 = vld [vmem:[%s3264_s0 + $0xf0] sm:$0xff] }
 0x150   :  { %3523 = vst [vmem:[#allocation76_spill] sm:$0xff] %v2633_v13  ;;  %v3533_v34 = vsel %vm2681_vm1, 4294967295, %v3532_v34  ;;  %vm2694_vm15 = vmand %vm752_vm0, %vm944_vm13  ;;  %vm3541_vm3 = vcmp.ge.f32.partialorder %v2337_v31, %v2665_v36  ;;  %v444_v5 = vmul.f32 -4.5, %v412_v35  ;;  %1540 = vpow2.f32 %v496_v39  ;;  %v1561_v39 = vld [vmem:[%s3266_s2 + $0xe8] sm:$0xff] }
 0x151   :  { %3524 = vst [vmem:[#allocation77_spill] sm:$0xff] %v2636_v17  ;;  %v3539_v27 = vsel %vm2694_vm15, 4294967295, %v3538_v27  ;;  %v413_v16 = vmul.f32 %v381_v21, %v381_v21  ;;  %vm2706_vm4 = vmand %vm753_vm12, %vm3541_vm3  ;;  %v574_v21 = vsub.f32 %v2685_v3, %v542_v22  ;;  %1542 = vpow2.f32 %v498_v51  ;;  %v3548_v22 = vld [vmem:[#allocation26_spill] sm:$0xff] }
 0x152   :  { %3525 = vst [vmem:[#allocation78_spill] sm:$0xff] %v2641_v30  ;;  %v3543_v58 = vsel %vm2706_vm4, 4294967295, %v3542_v58  ;;  %v384_v35 = vsub.f32 %v2718_v50, %v3548_v22  ;;  %vm766_vm13 = vcmp.le.f32.partialorder %v2403_v15, %v2241_v8  ;;  %v2754_v51 = vld [vmem:[#allocation2 + $0xa8] sm:$0xff]  ;;  %v3552_v22 = vld [vmem:[#allocation37_spill] sm:$0xff]  ;;  %v3553_v8 = vmov 0 }
 0x153   :  { %3527 = vst [vmem:[#allocation14_spill] sm:$0xff] %v2651_v9  ;;  %v2729_v9 = vmul.f32 %v563_v2, %v563_v2  ;;  %v445_v6 = vmul.f32 -4.5, %v413_v16  ;;  %v502_v16 = vmul.f32 1.442695, %v444_v5  ;;  %vm755_vm3 = vcmp.le.f32.partialorder %v2231_v55, %v3552_v22  ;;  %v2770_v5 = vld [vmem:[#allocation2 + $0xa0] sm:$0xff] }
 0x154   :  { %3529 = vst [vmem:[#allocation23_spill] sm:$0xff] %v2663_v10  ;;  %v2713_v10 = vld [vmem:[#allocation2 + $0x90] sm:$0xff]  ;;  %1171 = vperm.xlu2 %1487, %v1560_v41   ;;  %v416_v22 = vmul.f32 %v384_v35, %v384_v35 }
 0x155   :  { %3530 = vst [vmem:[#allocation79_spill] sm:$0xff] %v2667_v29  ;;  %v3546_v29 = vld [vmem:[#allocation16_spill] sm:$0xff]  ;;  %v564_v17 = vsub.f32 %v2713_v10, %v532_v46  ;;  %1175 = vperm.xlu0 %1485, %v1561_v39   ;;  %v2740_v2 = vpop.permute.xlu2 %912  ;;  %1544 = vpow2.f32 %v502_v16 }
 0x156   :  { %3534 = vst [vmem:[#allocation35_spill] sm:$0xff] %v3533_v34  ;;  %v1537_v34 = vpop.eup %1536  ;;  %v383_v13 = vsub.f32 %v2690_v37, %v3546_v29  ;;  %v1562_v29 = vld [vmem:[%s3266_s2 + $0xd8] sm:$0xff]  ;;  %v2742_v46 = vpop.permute.xlu1 %862  ;;  %vm958_vm12 = vcmp.ge.f32.partialorder %v2403_v15, %v2740_v2 }
 0x157   :  { %3535 = vst [vmem:[#allocation80_spill] sm:$0xff] %v2685_v3  ;;  %v1539_v31 = vpop.eup %1538  ;;  %1167 = vperm.xlu1 %1486, %v1562_v29   ;;  %vm2760_vm4 = vmand %vm766_vm13, %vm958_vm12  ;;  %v3556_v39 = vld [vmem:[#allocation32_spill] sm:$0xff]  ;;  %v2775_v29 = vmul.f32 %v564_v17, %v564_v17  ;;  %vm3559_vm13 = vcmp.ge.f32.partialorder %v2416_v53, %v2742_v46 }
 0x158   :  { %3536 = vst [vmem:[#allocation81_spill] sm:$0xff] %v2690_v37  ;;  %v415_v41 = vmul.f32 %v383_v13, %v383_v13  ;;  %v3554_v8 = vsel %vm2760_vm4, 4294967295, %v3553_v8  ;;  %v545_v15 = vmul.f32 1.1968268, %v1539_v31  ;;  %vm756_vm0 = vcmp.le.f32.partialorder %v2416_v53, %v3556_v39  ;;  %v1541_v13 = vpop.eup %1540  ;;  %v1563_v3 = vld [vmem:[%s3266_s2 + $0xf8] sm:$0xff] }
 0x159   :  { %3540 = vst [vmem:[#allocation30_spill] sm:$0xff] %v3539_v27  ;;  %v534_v27 = vmul.f32 1.1968268, %v1535_v44  ;;  %v2752_v44 = vmul.f32 %v574_v21, %v574_v21  ;;  %v3557_v21 = vmov 0  ;;  %vm2780_vm12 = vmand %vm756_vm0, %vm3559_vm13  ;;  %v3560_v31 = vmov 0 }
 0x15a   :  { %3544 = vst [vmem:[#allocation82_spill] sm:$0xff] %v3543_v58  ;;  %v535_v58 = vmul.f32 1.1968268, %v1537_v34  ;;  %v2746_v34 = vpop.permute.xlu0 %857  ;;  %v3561_v31 = vsel %vm2780_vm12, 4294967295, %v3560_v31  ;;  %vm769_vm0 = vcmp.le.f32.partialorder %v2498_v24, %v2289_v11  ;;  %v3575_v11 = vmov 0 }
 0x15b   :  { %3545 = vst [vmem:[#allocation83_spill] sm:$0xff] %v2718_v50  ;;  %vm947_vm1 = vcmp.ge.f32.partialorder %v2231_v55, %v2746_v34  ;;  %v504_v55 = vmul.f32 1.442695, %v445_v6  ;;  %v1543_v6 = vpop.eup %1542  ;;  %v566_v35 = vsub.f32 %v2770_v5, %v534_v27 }
 0x15c   :  { %3547 = vst [vmem:[#allocation16_spill] sm:$0xff] %v2729_v9  ;;  %vm2766_vm15 = vmand %vm755_vm3, %vm947_vm1  ;;  %1183 = vperm.xlu2 %1487, %v1563_v3   ;;  %v448_v9 = vmul.f32 -4.5, %v416_v22  ;;  %v538_v16 = vmul.f32 1.1968268, %v1543_v6  ;;  %v2825_v6 = vld [vmem:[#allocation2 + $0xc0] sm:$0xff] }
 0x15d   :  { %3549 = vst [vmem:[#allocation26_spill] sm:$0xff] %v2740_v2  ;;  %v3558_v21 = vsel %vm2766_vm15, 4294967295, %v3557_v21  ;;  %v2787_v2 = vld [vmem:[#allocation2 + $0xf8] sm:$0xff]  ;;  %1546 = vpow2.f32 %v504_v55  ;;  %v2801_v17 = vpop.permute.xlu2 %927  ;;  %v3566_v55 = vld [vmem:[#allocation39_spill] sm:$0xff]  ;;  %v2823_v22 = vmul.f32 %v566_v35, %v566_v35 }
 0x15e   :  { %3550 = vst [vmem:[#allocation84_spill] sm:$0xff] %v2752_v44  ;;  %v447_v44 = vmul.f32 -4.5, %v415_v41  ;;  %v577_v39 = vsub.f32 %v2787_v2, %v545_v15  ;;  %v3565_v41 = vld [vmem:[#allocation34_spill] sm:$0xff]  ;;  %v537_v15 = vmul.f32 1.1968268, %v1541_v13  ;;  %vm758_vm13 = vcmp.le.f32.partialorder %v2322_v43, %v3566_v55 }
 0x15f   :  { %3551 = vst [vmem:[#allocation85_spill] sm:$0xff] %v2754_v51  ;;  %vm759_vm1 = vcmp.le.f32.partialorder %v2470_v63, %v3565_v41  ;;  %v2833_v41 = vld [vmem:[#allocation2 + $0xb8] sm:$0xff]  ;;  %v510_v35 = vmul.f32 1.442695, %v448_v9 }
 0x160   :  { %3555 = vst [vmem:[#allocation37_spill] sm:$0xff] %v3554_v8  ;;  %v567_v8 = vsub.f32 %v2754_v51, %v535_v58  ;;  %v1564_v58 = vld [vmem:[%s3266_s2 + $0xf0] sm:$0xff]  ;;  %v2803_v51 = vpop.permute.xlu1 %877  ;;  %v2835_v55 = vmul.f32 %v577_v39, %v577_v39  ;;  %v569_v9 = vsub.f32 %v2833_v41, %v537_v15  ;;  %v1273_v13 = vmul.f32 %v2833_v41, %v2833_v41 }
 0x161   :  { %3562 = vst [vmem:[#allocation32_spill] sm:$0xff] %v2787_v2  ;;  %1179 = vperm.xlu1 %1486, %v1564_v58   ;;  %vm951_vm3 = vcmp.ge.f32.partialorder %v2470_v63, %v2803_v51  ;;  %v508_v58 = vmul.f32 1.442695, %v447_v44  ;;  %v1545_v2 = vpop.eup %1544 }
 0x162   :  { %3563 = vst [vmem:[#allocation86_spill] sm:$0xff] %v2801_v17  ;;  %v2805_v27 = vmul.f32 %v567_v8, %v567_v8  ;;  %v2809_v3 = vpop.permute.xlu0 %872  ;;  %vm2819_vm12 = vmand %vm759_vm1, %vm951_vm3  ;;  %v3567_v8 = vmov 0  ;;  %vm3574_vm1 = vcmp.ge.f32.partialorder %v2498_v24, %v2801_v17  ;;  %v3579_v24 = vld [vmem:[#allocation36_spill] sm:$0xff]  ;;  %v540_v39 = vmul.f32 1.1968268, %v1545_v2 }
 0x163   :  { %vm950_vm4 = vcmp.ge.f32.partialorder %v2322_v43, %v2809_v3  ;;  %v3568_v8 = vsel %vm2819_vm12, 4294967295, %v3567_v8  ;;  %3570 = vst [vmem:[#allocation39_spill] sm:$0xff] %v2825_v6  ;;  %v1547_v43 = vpop.eup %1546  ;;  %1548 = vpow2.f32 %v508_v58  ;;  %v2873_v15 = vmul.f32 %v569_v9, %v569_v9 }
 0x164   :  { %3564 = vst [vmem:[#allocation87_spill] sm:$0xff] %v2805_v27  ;;  %vm2829_vm15 = vmand %vm758_vm13, %vm950_vm4  ;;  %1550 = vpow2.f32 %v510_v35  ;;  %v541_v27 = vmul.f32 1.1968268, %v1547_v43  ;;  %vm761_vm13 = vcmp.le.f32.partialorder %v2456_v23, %v2141_v56  ;;  %v3586_v58 = vmov 0 }
 0x165   :  { %3569 = vst [vmem:[#allocation34_spill] sm:$0xff] %v3568_v8  ;;  %vm2846_vm4 = vmand %vm769_vm0, %vm3574_vm1  ;;  %v570_v8 = vsub.f32 %v2825_v6, %v538_v16  ;;  %vm762_vm0 = vcmp.le.f32.partialorder %v2563_v19, %v3579_v24  ;;  %v3582_v16 = vmov 0  ;;  %v2875_v24 = vld [vmem:[#allocation2 + $0xd8] sm:$0xff]  ;;  %v1068_v35 = vpop.permute.xlu2 %1067 }
 0x166   :  { %3573 = vst [vmem:[#allocation88_spill] sm:$0xff] %v2835_v55  ;;  %v3576_v11 = vsel %vm2846_vm4, 4294967295, %v3575_v11  ;;  %v573_v9 = vsub.f32 %v2875_v24, %v541_v27  ;;  %v3591_v27 = vmov 0 }
 0x167   :  { %3577 = vst [vmem:[#allocation89_spill] sm:$0xff] %v3576_v11  ;;  %v2863_v11 = vmul.f32 %v570_v8, %v570_v8  ;;  %v2881_v8 = vld [vmem:[#allocation2 + $0xd0] sm:$0xff] }
 0x168   :  { %v2855_v44 = vpop.permute.xlu1 %892  ;;  %3585 = vst [vmem:[#allocation93_spill] sm:$0xff] %v2875_v24  ;;  %v572_v6 = vsub.f32 %v2881_v8, %v540_v39  ;;  %v2899_v56 = vmul.f32 %v573_v9, %v573_v9  ;;  %v3595_v39 = vmov 0  ;;  %v2917_v9 = vld [vmem:[#allocation2 + $0xe8] sm:$0xff] }
 0x169   :  { %3578 = vst [vmem:[#allocation90_spill] sm:$0xff] %v2855_v44  ;;  %vm954_vm3 = vcmp.ge.f32.partialorder %v2563_v19, %v2855_v44  ;;  %v1549_v43 = vpop.eup %1548 }
 0x16a   :  { %v2859_v17 = vpop.permute.xlu0 %887  ;;  %3581 = vst [vmem:[#allocation91_spill] sm:$0xff] %v2863_v11  ;;  %vm2869_vm4 = vmand %vm762_vm0, %vm954_vm3  ;;  %v1551_v55 = vpop.eup %1550  ;;  %v543_v2 = vmul.f32 1.1968268, %v1549_v43  ;;  %v3599_v11 = vld [vmem:[#allocation40_spill] sm:$0xff]  ;;  %v1565_v43 = vld [vmem:[#allocation2 + $0x8] sm:$0xff] }
 0x16b   :  { %3580 = vst [vmem:[#allocation36_spill] sm:$0xff] %v2859_v17  ;;  %vm953_vm1 = vcmp.ge.f32.partialorder %v2456_v23, %v2859_v17  ;;  %v3583_v16 = vsel %vm2869_vm4, 4294967295, %v3582_v16  ;;  %v544_v44 = vmul.f32 1.1968268, %v1551_v55  ;;  %v3589_v23 = vld [vmem:[#allocation38_spill] sm:$0xff]  ;;  %v2909_v55 = vmul.f32 %v572_v6, %v572_v6 }
 0x16c   :  { %3584 = vst [vmem:[#allocation92_spill] sm:$0xff] %v3583_v16  ;;  %vm2877_vm12 = vmand %vm761_vm13, %vm953_vm1  ;;  %vm765_vm0 = vcmp.le.f32.partialorder %v2641_v30, %v3589_v23  ;;  %vm764_vm13 = vcmp.le.f32.partialorder %v2612_v61, %v2188_v26  ;;  %v2911_v23 = vld [vmem:[#allocation2 + $0xf0] sm:$0xff]  ;;  %v575_v6 = vsub.f32 %v2917_v9, %v543_v2  ;;  %v3603_v2 = vmov 0 }
 0x16d   :  { %v3587_v58 = vsel %vm2877_vm12, 4294967295, %v3586_v58  ;;  %3590 = vst [vmem:[#allocation38_spill] sm:$0xff] %v2899_v56  ;;  %v576_v24 = vsub.f32 %v2911_v23, %v544_v44 }
 0x16e   :  { %3594 = vst [vmem:[#allocation96_spill] sm:$0xff] %v2911_v23  ;;  %v2941_v44 = vmul.f32 %v575_v6, %v575_v6  ;;  %v1250_v6 = vmul.f32 %v2260_v40, %v2260_v40  ;;  %v1251_v23 = vmul.f32 %v1565_v43, %v1565_v43  ;;  %v1568_v40 = vld [vmem:[%s3264_s0 + $0x10] sm:$0xff] }
 0x16f   :  { %3597 = vst [vmem:[#allocation97_spill] sm:$0xff] %v2917_v9  ;;  %v2935_v26 = vmul.f32 %v576_v24, %v576_v24  ;;  %v1252_v24 = vmul.f32 %v2277_v33, %v2277_v33  ;;  %v3612_v33 = vld [vmem:[#allocation43_spill] sm:$0xff] }
 0x170   :  { %v2891_v19 = vpop.permute.xlu1 %907  ;;  %3602 = vst [vmem:[#allocation100_spill] sm:$0xff] %v2941_v44  ;;  %v3613_v56 = vsel %vm2153_vm2, %v3612_v33, 0.0  ;;  %vm1221_vm2 = vcmp.lt.f32.partialorder %v1569_v59, %v2353_v62  ;;  %v1572_v62 = vld [vmem:[%s3264_s0 + $0x28] sm:$0xff]  ;;  %v3623_v59 = vsel %vm2460_vm7, %v2409_v52, 0.0 }
 0x171   :  { %3588 = vst [vmem:[#allocation94_spill] sm:$0xff] %v2891_v19  ;;  %vm957_vm3 = vcmp.ge.f32.partialorder %v2641_v30, %v2891_v19  ;;  %v1076_v30 = vpop.permute.xlu2 %1075 }
 0x172   :  { %v2895_v17 = vpop.permute.xlu0 %902  ;;  %vm2905_vm4 = vmand %vm765_vm0, %vm957_vm3  ;;  %vm768_vm0 = vcmp.le.f32.partialorder %v2718_v50, %v3599_v11  ;;  %3601 = vst [vmem:[#allocation99_spill] sm:$0xff] %v2935_v26  ;;  %v3606_v11 = vmov 0 }
 0x173   :  { %vm956_vm1 = vcmp.ge.f32.partialorder %v2612_v61, %v2895_v17  ;;  %v3592_v27 = vsel %vm2905_vm4, 4294967295, %v3591_v27 }
 0x174   :  { %3593 = vst [vmem:[#allocation95_spill] sm:$0xff] %v3592_v27  ;;  %vm2913_vm12 = vmand %vm764_vm13, %vm956_vm1  ;;  %vm767_vm13 = vcmp.le.f32.partialorder %v2690_v37, %v2235_v1 }
 0x175   :  { %v3596_v39 = vsel %vm2913_vm12, 4294967295, %v3595_v39 }
 0x178   :  { %v2927_v19 = vpop.permute.xlu1 %922 }
 0x179   :  { %3598 = vst [vmem:[#allocation98_spill] sm:$0xff] %v2927_v19  ;;  %vm960_vm3 = vcmp.ge.f32.partialorder %v2718_v50, %v2927_v19  ;;  %v1566_v50 = vld [vmem:[%s3264_s0 + $0x8] sm:$0xff]  ;;  %v1088_v43 = vpop.permute.xlu2 %1087 }
 0x17a   :  { %v2931_v16 = vpop.permute.xlu0 %917  ;;  %vm2943_vm4 = vmand %vm768_vm0, %vm960_vm3  ;;  %v3609_v19 = vld [vmem:[#allocation42_spill] sm:$0xff] }
 0x17b   :  { %3600 = vst [vmem:[#allocation40_spill] sm:$0xff] %v2931_v16  ;;  %vm959_vm1 = vcmp.ge.f32.partialorder %v2690_v37, %v2931_v16  ;;  %v3604_v2 = vsel %vm2943_vm4, 4294967295, %v3603_v2  ;;  %vm1219_vm0 = vcmp.lt.f32.partialorder %v1566_v50, %v3609_v19  ;;  %v3610_v50 = vsel %vm2312_vm14, %v2308_v49, 0.0 }
 0x17c   :  { %3605 = vst [vmem:[#allocation101_spill] sm:$0xff] %v3604_v2  ;;  %vm2947_vm12 = vmand %vm767_vm13, %vm959_vm1  ;;  %v1567_v2 = vld [vmem:[%s3264_s0] sm:$0xff]  ;;  %vm1220_vm13 = vcmp.lt.f32.partialorder %v1568_v40, %v2361_v14  ;;  %v1283_v19 = vsel %vm1219_vm0, %v1251_v23, 0.0  ;;  %v3614_v14 = vsel %vm2379_vm9, %v2340_v18, 0.0  ;;  %v1253_v49 = vmul.f32 %v2299_v12, %v2299_v12 }
 0x17d   :  { %v3607_v11 = vsel %vm2947_vm12, 4294967295, %v3606_v11  ;;  %vm1218_vm3 = vcmp.lt.f32.partialorder %v1567_v2, %v2285_v60  ;;  %v1284_v16 = vsel %vm1220_vm13, %v1252_v24, 0.0  ;;  %v1571_v18 = vld [vmem:[%s3264_s0 + $0x20] sm:$0xff]  ;;  %v1255_v12 = vmul.f32 %v2310_v7, %v2310_v7 }
 0x17e   :  { %3608 = vst [vmem:[#allocation102_spill] sm:$0xff] %v3607_v11  ;;  %v1282_v26 = vsel %vm1218_vm3, %v1250_v6, 0.0  ;;  %v1188_v6 = vmul.f32 %v1068_v35, %v3614_v14  ;;  %v1316_v40 = vmul.f32 %v1284_v16, %v1068_v35  ;;  %vm1222_vm14 = vcmp.lt.f32.partialorder %v1571_v18, %v3615_v42  ;;  %v1574_v42 = vld [vmem:[%s3264_s0 + $0x38] sm:$0xff] }
 0x17f   :  { %v1285_v35 = vsel %vm1221_vm2, %v1253_v49, 0.0  ;;  %vm1223_vm9 = vcmp.lt.f32.partialorder %v1572_v62, %v2429_v47  ;;  %v1573_v47 = vld [vmem:[%s3264_s0 + $0x30] sm:$0xff]  ;;  %vm1230_vm3 = vcmp.lt.f32.partialorder %v2265_v38, %v2585_v48  ;;  %vm3651_vm13 = vnez %v3518_v45 }
 0x180   :  { %v1064_v44 = vpop.permute.xlu1 %1063  ;;  %v1287_v57 = vsel %vm1223_vm9, %v1255_v12, 0.0  ;;  %v1264_v45 = vmul.f32 %v2547_v28, %v2547_v28  ;;  %v3661_v28 = vld [vmem:[#allocation59_spill] sm:$0xff] }
 0x181   :  { %v1187_v27 = vmul.f32 %v1064_v44, %v3613_v56  ;;  %v1315_v37 = vmul.f32 %v1283_v19, %v1064_v44  ;;  %v1570_v44 = vld [vmem:[#allocation2 + $0x20] sm:$0xff] }
 0x182   :  { %v1060_v1 = vpop.permute.xlu0 %1059  ;;  %v1254_v24 = vmul.f32 %v1570_v44, %v1570_v44 }
 0x183   :  { %v1186_v11 = vmul.f32 %v1060_v1, %v3610_v50  ;;  %v1314_v60 = vmul.f32 %v1282_v26, %v1060_v1 }
 0x184   :  { %v1286_v19 = vsel %vm1222_vm14, %v1254_v24, 0.0 }
 0x185   :  { %v1346_v23 = vadd.f32 %v1187_v27, %v1186_v11  ;;  %v1378_v9 = vadd.f32 %v1315_v37, %v1314_v60  ;;  %v1100_v27 = vpop.permute.xlu2 %1099  ;;  %v3618_v60 = vld [vmem:[#allocation45_spill] sm:$0xff]  ;;  %v1318_v33 = vmul.f32 %v1286_v19, %v1076_v30 }
 0x186   :  { %v3619_v7 = vsel %vm2198_vm5, %v3618_v60, 0.0  ;;  %v3627_v19 = vld [vmem:[#allocation41_spill] sm:$0xff] }
 0x187   :  { %v1347_v56 = vadd.f32 %v1346_v23, %v1188_v6  ;;  %v1379_v26 = vadd.f32 %v1378_v9, %v1316_v40  ;;  %v3616_v9 = vsel %vm2393_vm10, %v2357_v4, 0.0  ;;  %v1190_v2 = vmul.f32 %v1076_v30, %v3619_v7  ;;  %v3620_v40 = vld [vmem:[#allocation11_spill] sm:$0xff]  ;;  %v3621_v23 = vld [vmem:[#allocation61_spill] sm:$0xff] }
 0x188   :  { %v1072_v16 = vpop.permute.xlu1 %1071  ;;  %vm1224_vm1 = vcmp.lt.f32.partialorder %v1573_v47, %v3620_v40  ;;  %v1256_v4 = vmul.f32 %v3621_v23, %v3621_v23  ;;  %v3629_v60 = vld [vmem:[#allocation29_spill] sm:$0xff]  ;;  %v3632_v47 = vld [vmem:[#allocation51_spill] sm:$0xff] }
 0x189   :  { %v1189_v11 = vmul.f32 %v1072_v16, %v3616_v9  ;;  %v1317_v1 = vmul.f32 %v1285_v35, %v1072_v16  ;;  %v3625_v16 = vld [vmem:[#allocation50_spill] sm:$0xff]  ;;  %v3626_v9 = vld [vmem:[#allocation19_spill] sm:$0xff]  ;;  %v3630_v7 = vsel %vm2475_vm11, %v3629_v60, 0.0  ;;  %v3633_v40 = vsel %vm2249_vm8, %v3632_v47, 0.0 }
 0x18a   :  { %v1080_v37 = vpop.permute.xlu0 %1079  ;;  %vm1225_vm5 = vcmp.lt.f32.partialorder %v1574_v42, %v3625_v16  ;;  %v3638_v16 = vld [vmem:[#allocation68_spill] sm:$0xff] }
 0x18b   :  { %v1348_v14 = vadd.f32 %v1347_v56, %v1189_v11  ;;  %v1380_v6 = vadd.f32 %v1379_v26, %v1317_v1  ;;  %v1191_v44 = vmul.f32 %v1080_v37, %v3623_v59  ;;  %v1319_v24 = vmul.f32 %v1287_v57, %v1080_v37  ;;  %v3624_v56 = vld [vmem:[#allocation48_spill] sm:$0xff]  ;;  %v1575_v37 = vld [vmem:[%s3264_s0 + $0x40] sm:$0xff] }
 0x18c   :  { %v1257_v26 = vmul.f32 %v3624_v56, %v3624_v56  ;;  %v1258_v11 = vmul.f32 %v3626_v9, %v3626_v9  ;;  %v1288_v1 = vsel %vm1224_vm1, %v1256_v4, 0.0  ;;  %vm1226_vm10 = vcmp.lt.f32.partialorder %v1575_v37, %v3627_v19  ;;  %v3640_v19 = vld [vmem:[#allocation53_spill] sm:$0xff] }
 0x18d   :  { %v1349_v18 = vadd.f32 %v1348_v14, %v1190_v2  ;;  %v1381_v30 = vadd.f32 %v1380_v6, %v1318_v33  ;;  %v1193_v57 = vmul.f32 %v1088_v43, %v3633_v40  ;;  %v1112_v4 = vpop.permute.xlu2 %1111  ;;  %v3643_v6 = vld [vmem:[#allocation71_spill] sm:$0xff] }
 0x18e   :  { %v1289_v14 = vsel %vm1225_vm5, %v1257_v26, 0.0  ;;  %v3639_v26 = vsel %vm2538_vm6, %v3638_v16, 0.0  ;;  %vm3644_vm11 = vnez %v3643_v6 }
 0x18f   :  { %v1350_v12 = vadd.f32 %v1349_v18, %v1191_v44  ;;  %v1382_v35 = vadd.f32 %v1381_v30, %v1319_v24  ;;  %v1321_v23 = vmul.f32 %v1289_v14, %v1088_v43  ;;  %v3634_v44 = vld [vmem:[#allocation12_spill] sm:$0xff]  ;;  %v3635_v24 = vld [vmem:[#allocation49_spill] sm:$0xff]  ;;  %v1290_v18 = vsel %vm1226_vm10, %v1258_v11, 0.0  ;;  %v3636_v30 = vld [vmem:[#allocation67_spill] sm:$0xff] }
 0x190   :  { %v1084_v52 = vpop.permute.xlu1 %1083  ;;  %vm1227_vm7 = vcmp.lt.f32.partialorder %v3635_v24, %v3634_v44  ;;  %v1259_v56 = vmul.f32 %v3636_v30, %v3636_v30  ;;  %v1260_v43 = vmul.f32 %v3640_v19, %v3640_v19  ;;  %v3645_v47 = vsel %vm3644_vm11, %v2545_v54, 0.0  ;;  %v3653_v19 = vld [vmem:[#allocation56_spill] sm:$0xff] }
 0x191   :  { %v1192_v2 = vmul.f32 %v1084_v52, %v3630_v7  ;;  %v1320_v33 = vmul.f32 %v1288_v1, %v1084_v52  ;;  %v3642_v7 = vld [vmem:[#allocation64_spill] sm:$0xff]  ;;  %v3652_v54 = vsel %vm3651_vm13, %v2569_v0, 0.0 }
 0x192   :  { %v1092_v62 = vpop.permute.xlu0 %1091  ;;  %v1291_v14 = vsel %vm1227_vm7, %v1259_v56, 0.0 }
 0x193   :  { %v1351_v49 = vadd.f32 %v1350_v12, %v1192_v2  ;;  %v1383_v59 = vadd.f32 %v1382_v35, %v1320_v33  ;;  %v1194_v9 = vmul.f32 %v1092_v62, %v3639_v26  ;;  %v1322_v52 = vmul.f32 %v1290_v18, %v1092_v62  ;;  %v1576_v12 = vld [vmem:[%s3264_s0 + $0x50] sm:$0xff]  ;;  %v3641_v35 = vld [vmem:[#allocation54_spill] sm:$0xff]  ;;  %v1577_v62 = vld [vmem:[%s3264_s0 + $0x58] sm:$0xff] }
 0x194   :  { %vm1228_vm8 = vcmp.lt.f32.partialorder %v1576_v12, %v3641_v35  ;;  %v1261_v2 = vmul.f32 %v3642_v7, %v3642_v7  ;;  %vm1229_vm6 = vcmp.lt.f32.partialorder %v1577_v62, %v2591_v20  ;;  %v3650_v20 = vld [vmem:[#allocation70_spill] sm:$0xff]  ;;  %v3654_v12 = vld [vmem:[#allocation15_spill] sm:$0xff] }
 0x195   :  { %v1352_v1 = vadd.f32 %v1351_v49, %v1193_v57  ;;  %v1384_v37 = vadd.f32 %v1383_v59, %v1321_v23  ;;  %v1292_v23 = vsel %vm1228_vm8, %v1260_v43, 0.0  ;;  %v3646_v49 = vld [vmem:[#allocation57_spill] sm:$0xff]  ;;  %v3648_v59 = vld [vmem:[#allocation55_spill] sm:$0xff]  ;;  %v1262_v16 = vmul.f32 %v3650_v20, %v3650_v20  ;;  %v1124_v26 = vpop.permute.xlu2 %1123  ;;  %v1578_v43 = vld [vmem:[%s3264_s0 + $0x68] sm:$0xff] }
 0x196   :  { %vm3647_vm0 = vnez %v3646_v49  ;;  %v1324_v18 = vmul.f32 %v1292_v23, %v1100_v27  ;;  %v1293_v42 = vsel %vm1229_vm6, %v1261_v2, 0.0  ;;  %vm1231_vm2 = vcmp.lt.f32.partialorder %v1578_v43, %v3654_v12  ;;  %v1579_v7 = vld [vmem:[%s3264_s0 + $0x70] sm:$0xff]  ;;  %v3655_v2 = vld [vmem:[#allocation28_spill] sm:$0xff] }
 0x197   :  { %v1353_v11 = vadd.f32 %v1352_v1, %v1194_v9  ;;  %v1385_v50 = vadd.f32 %v1384_v37, %v1322_v52  ;;  %v3649_v44 = vsel %vm3647_vm0, %v3648_v59, 0.0  ;;  %vm1232_vm14 = vcmp.lt.f32.partialorder %v1579_v7, %v2671_v32  ;;  %v3663_v59 = vld [vmem:[#allocation58_spill] sm:$0xff]  ;;  %v3664_v32 = vld [vmem:[#allocation77_spill] sm:$0xff]  ;;  %v3671_v12 = vld [vmem:[#allocation76_spill] sm:$0xff] }
 0x198   :  { %v1096_v33 = vpop.permute.xlu1 %1095  ;;  %v1196_v24 = vmul.f32 %v1100_v27, %v3649_v44  ;;  %v1263_v27 = vmul.f32 %v3653_v19, %v3653_v19  ;;  %vm3656_vm9 = vnez %v3655_v2  ;;  %vm1233_vm5 = vcmp.lt.f32.partialorder %v3663_v59, %v2665_v36 }
 0x199   :  { %v1195_v40 = vmul.f32 %v1096_v33, %v3645_v47  ;;  %v1323_v57 = vmul.f32 %v1291_v14, %v1096_v33  ;;  %v3657_v33 = vld [vmem:[#allocation73_spill] sm:$0xff]  ;;  %v1296_v44 = vsel %vm1232_vm14, %v1264_v45, 0.0  ;;  %v1581_v45 = vld [vmem:[%s3264_s0 + $0x88] sm:$0xff]  ;;  %vm1236_vm0 = vcmp.lt.f32.partialorder %v2416_v53, %v2742_v46 }
 0x19a   :  { %v1104_v60 = vpop.permute.xlu0 %1103  ;;  %v3658_v14 = vsel %vm3656_vm9, %v3657_v33, 0.0  ;;  %v1295_v47 = vsel %vm1231_vm2, %v1263_v27, 0.0  ;;  %vm1235_vm8 = vcmp.lt.f32.partialorder %v1581_v45, %v2746_v34  ;;  %v1268_v34 = vmul.f32 %v2713_v10, %v2713_v10  ;;  %v3683_v53 = vld [vmem:[#allocation18_spill] sm:$0xff] }
 0x19b   :  { %v1354_v30 = vadd.f32 %v1353_v11, %v1195_v40  ;;  %v1386_v56 = vadd.f32 %v1385_v50, %v1323_v57  ;;  %v1197_v9 = vmul.f32 %v1104_v60, %v3652_v54  ;;  %v1325_v52 = vmul.f32 %v1293_v42, %v1104_v60  ;;  %v3659_v40 = vld [vmem:[#allocation27_spill] sm:$0xff] }
 0x19c   :  { %v1294_v60 = vsel %vm1230_vm3, %v1262_v16, 0.0  ;;  %vm3660_vm1 = vnez %v3659_v40  ;;  %v1327_v38 = vmul.f32 %v1295_v47, %v1112_v4  ;;  %vm3679_vm3 = vnez %v3558_v21 }
 0x19d   :  { %v1355_v1 = vadd.f32 %v1354_v30, %v1196_v24  ;;  %v1387_v37 = vadd.f32 %v1386_v56, %v1324_v18  ;;  %v3662_v57 = vsel %vm3660_vm1, %v3661_v28, 0.0  ;;  %v1265_v24 = vmul.f32 %v3664_v32, %v3664_v32  ;;  %v3665_v18 = vld [vmem:[#allocation30_spill] sm:$0xff]  ;;  %v1582_v32 = vld [vmem:[%s3264_s0 + $0x98] sm:$0xff] }
 0x19e   :  { %v1199_v23 = vmul.f32 %v1112_v4, %v3662_v57  ;;  %vm3666_vm10 = vnez %v3665_v18  ;;  %v3667_v30 = vld [vmem:[#allocation14_spill] sm:$0xff]  ;;  %vm1237_vm13 = vcmp.lt.f32.partialorder %v1582_v32, %v3683_v53  ;;  %v1270_v21 = vmul.f32 %v2770_v5, %v2770_v5  ;;  %v3706_v53 = vld [vmem:[#allocation39_spill] sm:$0xff] }
 0x19f   :  { %v1356_v35 = vadd.f32 %v1355_v1, %v1197_v9  ;;  %v1388_v11 = vadd.f32 %v1387_v37, %v1325_v52  ;;  %v3668_v56 = vsel %vm3666_vm10, %v3667_v30, 0.0  ;;  %v3669_v9 = vld [vmem:[#allocation60_spill] sm:$0xff]  ;;  %v1580_v52 = vld [vmem:[%s3264_s0 + $0x80] sm:$0xff]  ;;  %v1136_v37 = vpop.permute.xlu2 %1135  ;;  %v1300_v30 = vsel %vm1236_vm0, %v1268_v34, 0.0 }
 0x1a0   :  { %v1108_v0 = vpop.permute.xlu1 %1107  ;;  %v1266_v4 = vmul.f32 %v3669_v9, %v3669_v9  ;;  %v3670_v1 = vld [vmem:[#allocation21_spill] sm:$0xff]  ;;  %vm3684_vm14 = vnez %v3561_v31  ;;  %vm1239_vm1 = vcmp.lt.f32.partialorder %v2470_v63, %v2803_v51  ;;  %v3693_v63 = vld [vmem:[#allocation20_spill] sm:$0xff]  ;;  %vm1244_vm0 = vcmp.lt.f32.partialorder %v2612_v61, %v2895_v17 }
 0x1a1   :  { %v1198_v62 = vmul.f32 %v1108_v0, %v3658_v14  ;;  %v1326_v6 = vmul.f32 %v1294_v60, %v1108_v0  ;;  %vm1234_vm7 = vcmp.lt.f32.partialorder %v1580_v52, %v3670_v1  ;;  %v3672_v0 = vld [vmem:[#allocation82_spill] sm:$0xff]  ;;  %v3675_v14 = vld [vmem:[#allocation17_spill] sm:$0xff] }
 0x1a2   :  { %v1116_v50 = vpop.permute.xlu0 %1115  ;;  %vm3673_vm6 = vnez %v3672_v0  ;;  %v1298_v33 = vsel %vm1234_vm7, %v1266_v4, 0.0  ;;  %vm3676_vm11 = vnez %v3675_v14  ;;  %v3686_v4 = vld [vmem:[#allocation24_spill] sm:$0xff]  ;;  %v3688_v52 = vld [vmem:[#allocation69_spill] sm:$0xff]  ;;  %v3692_v0 = vld [vmem:[#allocation31_spill] sm:$0xff] }
 0x1a3   :  { %v1357_v48 = vadd.f32 %v1356_v35, %v1198_v62  ;;  %v1389_v49 = vadd.f32 %v1388_v11, %v1326_v6  ;;  %v1200_v42 = vmul.f32 %v1116_v50, %v3668_v56  ;;  %v1328_v20 = vmul.f32 %v1296_v44, %v1116_v50  ;;  %v3677_v62 = vld [vmem:[#allocation62_spill] sm:$0xff]  ;;  %v3682_v44 = vld [vmem:[#allocation63_spill] sm:$0xff]  ;;  %v1583_v56 = vld [vmem:[%s3264_s0 + $0xa0] sm:$0xff] }
 0x1a4   :  { %v1267_v35 = vmul.f32 %v3671_v12, %v3671_v12  ;;  %v1297_v50 = vsel %vm1233_vm5, %v1265_v24, 0.0  ;;  %v3674_v60 = vsel %vm3673_vm6, %v2701_v25, 0.0  ;;  %v3678_v6 = vsel %vm3676_vm11, %v3677_v62, 0.0  ;;  %v3680_v25 = vld [vmem:[#allocation16_spill] sm:$0xff]  ;;  %v3690_v12 = vld [vmem:[#allocation85_spill] sm:$0xff] }
 0x1a5   :  { %v1358_v16 = vadd.f32 %v1357_v48, %v1199_v23  ;;  %v1390_v54 = vadd.f32 %v1389_v49, %v1327_v38  ;;  %v1202_v47 = vmul.f32 %v1124_v26, %v3678_v6  ;;  %v1330_v36 = vmul.f32 %v1298_v33, %v1124_v26  ;;  %v3694_v14 = vld [vmem:[#allocation36_spill] sm:$0xff]  ;;  %v3695_v62 = vld [vmem:[#allocation65_spill] sm:$0xff]  ;;  %v3696_v6 = vld [vmem:[#allocation34_spill] sm:$0xff] }
 0x1a6   :  { %v1299_v57 = vsel %vm1235_vm8, %v1267_v35, 0.0  ;;  %v3681_v23 = vsel %vm3679_vm3, %v3680_v25, 0.0  ;;  %v1269_v26 = vmul.f32 %v3682_v44, %v3682_v44  ;;  %vm1238_vm2 = vcmp.lt.f32.partialorder %v1583_v56, %v2809_v3  ;;  %v3700_v34 = vld [vmem:[#allocation33_spill] sm:$0xff]  ;;  %v3702_v25 = vld [vmem:[#allocation74_spill] sm:$0xff]  ;;  %v3705_v44 = vld [vmem:[#allocation72_spill] sm:$0xff] }
 0x1a7   :  { %v1359_v19 = vadd.f32 %v1358_v16, %v1200_v42  ;;  %v1391_v27 = vadd.f32 %v1390_v54, %v1328_v20  ;;  %v3685_v42 = vsel %vm3684_vm14, %v2775_v29, 0.0  ;;  %v1148_v9 = vpop.permute.xlu2 %1147  ;;  %vm3687_vm9 = vnez %v3686_v4  ;;  %v3709_v56 = vld [vmem:[#allocation75_spill] sm:$0xff]  ;;  %v3721_v61 = vld [vmem:[#allocation93_spill] sm:$0xff] }
 0x1a8   :  { %v1120_v11 = vpop.permute.xlu1 %1119  ;;  %v1301_v54 = vsel %vm1237_vm13, %v1269_v26, 0.0  ;;  %v3689_v5 = vsel %vm3687_vm9, %v3688_v52, 0.0  ;;  %v1302_v3 = vsel %vm1238_vm2, %v1270_v21, 0.0  ;;  %v1271_v31 = vmul.f32 %v3690_v12, %v3690_v12  ;;  %v3715_v12 = vld [vmem:[#allocation35_spill] sm:$0xff] }
 0x1a9   :  { %v1201_v7 = vmul.f32 %v1120_v11, %v3674_v60  ;;  %v1329_v2 = vmul.f32 %v1297_v50, %v1120_v11  ;;  %v1205_v1 = vmul.f32 %v1136_v37, %v3689_v5  ;;  %v3691_v29 = vsel %vm2829_vm15, %v2823_v22, 0.0  ;;  %v1584_v60 = vld [vmem:[%s3264_s0 + $0xb0] sm:$0xff]  ;;  %v3711_v5 = vld [vmem:[#allocation92_spill] sm:$0xff] }
 0x1aa   :  { %v1128_v43 = vpop.permute.xlu0 %1127  ;;  %vm1240_vm5 = vcmp.lt.f32.partialorder %v1584_v60, %v3693_v63  ;;  %v1303_v33 = vsel %vm1239_vm1, %v1271_v31, 0.0  ;;  %vm1241_vm15 = vcmp.lt.f32.partialorder %v3695_v62, %v3694_v14  ;;  %vm3697_vm10 = vnez %v3696_v6  ;;  %v3717_v31 = vld [vmem:[#allocation79_spill] sm:$0xff]  ;;  %v1586_v14 = vld [vmem:[%s3264_s0 + $0xe0] sm:$0xff]  ;;  %v3725_v62 = vld [vmem:[#allocation26_spill] sm:$0xff] }
 0x1ab   :  { %v1360_v40 = vadd.f32 %v1359_v19, %v1201_v7  ;;  %v1392_v28 = vadd.f32 %v1391_v27, %v1329_v2  ;;  %v1203_v38 = vmul.f32 %v1128_v43, %v3681_v23  ;;  %v1331_v48 = vmul.f32 %v1299_v57, %v1128_v43 }
 0x1ac   :  { %v1333_v19 = vmul.f32 %v1301_v54, %v1136_v37  ;;  %v1272_v37 = vmul.f32 %v3692_v0, %v3692_v0  ;;  %vm3701_vm7 = vnez %v3700_v34  ;;  %v1305_v32 = vsel %vm1241_vm15, %v1273_v13, 0.0  ;;  %v3720_v0 = vld [vmem:[#allocation78_spill] sm:$0xff]  ;;  %v3729_v34 = vld [vmem:[#allocation95_spill] sm:$0xff] }
 0x1ad   :  { %v1361_v49 = vadd.f32 %v1360_v40, %v1202_v47  ;;  %v1393_v59 = vadd.f32 %v1392_v28, %v1330_v36  ;;  %v3698_v47 = vld [vmem:[#allocation87_spill] sm:$0xff]  ;;  %v3703_v23 = vsel %vm3701_vm7, %v3702_v25, 0.0  ;;  %vm3707_vm6 = vnez %v3587_v58  ;;  %v3731_v25 = vld [vmem:[#allocation38_spill] sm:$0xff] }
 0x1ae   :  { %v3699_v36 = vsel %vm3697_vm10, %v3698_v47, 0.0  ;;  %v1304_v57 = vsel %vm1240_vm5, %v1272_v37, 0.0  ;;  %v1276_v58 = vmul.f32 %v2881_v8, %v2881_v8  ;;  %vm3712_vm3 = vnez %v3711_v5  ;;  %v3744_v5 = vld [vmem:[#allocation86_spill] sm:$0xff] }
 0x1af   :  { %v1362_v46 = vadd.f32 %v1361_v49, %v1203_v38  ;;  %v1394_v24 = vadd.f32 %v1393_v59, %v1331_v48  ;;  %v1208_v38 = vmul.f32 %v1148_v9, %v3703_v23  ;;  %v1336_v48 = vmul.f32 %v1304_v57, %v1148_v9  ;;  %v3704_v59 = vld [vmem:[#allocation90_spill] sm:$0xff]  ;;  %v1160_v26 = vpop.permute.xlu2 %1159  ;;  %v3728_v57 = vld [vmem:[#allocation81_spill] sm:$0xff] }
 0x1b0   :  { %v1132_v18 = vpop.permute.xlu1 %1131  ;;  %vm1242_vm8 = vcmp.lt.f32.partialorder %v3705_v44, %v3704_v59  ;;  %vm3716_vm13 = vnez %v3715_v12  ;;  %v1308_v37 = vsel %vm1244_vm0, %v1276_v58, 0.0  ;;  %v1277_v17 = vmul.f32 %v3721_v61, %v3721_v61  ;;  %v3733_v59 = vld [vmem:[#allocation37_spill] sm:$0xff]  ;;  %v3735_v44 = vld [vmem:[#allocation84_spill] sm:$0xff] }
 0x1b1   :  { %v1204_v20 = vmul.f32 %v1132_v18, %v3685_v42  ;;  %v1332_v16 = vmul.f32 %v1300_v30, %v1132_v18  ;;  %v1275_v42 = vmul.f32 %v3709_v56, %v3709_v56  ;;  %vm3722_vm14 = vnez %v3596_v39 }
 0x1b2   :  { %v1140_v10 = vpop.permute.xlu0 %1139  ;;  %v3723_v60 = vsel %vm3722_vm14, %v2909_v55, 0.0  ;;  %vm1246_vm9 = vcmp.lt.f32.partialorder %v1586_v14, %v3725_v62  ;;  %vm3730_vm5 = vnez %v3729_v34  ;;  %vm3734_vm15 = vnez %v3733_v59 }
 0x1b3   :  { %v1363_v27 = vadd.f32 %v1362_v46, %v1204_v20  ;;  %v1395_v43 = vadd.f32 %v1394_v24, %v1332_v16  ;;  %v1206_v35 = vmul.f32 %v1140_v10, %v3691_v29  ;;  %v1334_v11 = vmul.f32 %v1302_v3, %v1140_v10  ;;  %v1585_v20 = vld [vmem:[%s3264_s0 + $0xc8] sm:$0xff]  ;;  %v3710_v16 = vld [vmem:[#allocation23_spill] sm:$0xff]  ;;  %s1670_s0 = smov [#allocation5]  }
 0x1b4   :  { %v1274_v46 = vmul.f32 %v3706_v53, %v3706_v53  ;;  %v3708_v24 = vsel %vm3707_vm6, %v2873_v15, 0.0  ;;  %vm1243_vm11 = vcmp.lt.f32.partialorder %v1585_v20, %v3710_v16  ;;  %v3718_v29 = vsel %vm3716_vm13, %v3717_v31, 0.0  ;;  %v3741_v20 = vld [vmem:[#allocation100_spill] sm:$0xff]  ;;  %s1415_s1 = sshll.u32 %s1670_s0, 4  ;;  %s1416_s1 = int_to_ptr.vmem [resolvable:$true] %s1415_s1 }
 0x1b5   :  { %v1364_v50 = vadd.f32 %v1363_v27, %v1205_v1  ;;  %v1396_v45 = vadd.f32 %v1395_v43, %v1333_v19  ;;  %v3713_v1 = vld [vmem:[#allocation91_spill] sm:$0xff]  ;;  %v1307_v3 = vsel %vm1243_vm11, %v1275_v42, 0.0  ;;  %v1211_v8 = vmul.f32 %v1160_v26, %v3718_v29 }
 0x1b6   :  { %v1306_v52 = vsel %vm1242_vm8, %v1274_v46, 0.0  ;;  %v3714_v19 = vsel %vm3712_vm3, %v3713_v1, 0.0  ;;  %v3732_v23 = vsel %vm3730_vm5, %v3731_v25, 0.0  ;;  %v3742_v16 = vsel %vm2947_vm12, %v3741_v20, 0.0  ;;  %v3745_v1 = vld [vmem:[#allocation13_spill] sm:$0xff]  ;;  %v3747_v29 = vld [vmem:[#allocation99_spill] sm:$0xff] }
 0x1b7   :  { %v1365_v51 = vadd.f32 %v1364_v50, %v1206_v35  ;;  %v1397_v7 = vadd.f32 %v1396_v45, %v1334_v11  ;;  %v1339_v35 = vmul.f32 %v1307_v3, %v1160_v26  ;;  %v3719_v45 = vld [vmem:[#allocation94_spill] sm:$0xff]  ;;  %v1172_v13 = vpop.permute.xlu2 %1171  ;;  %v3736_v26 = vsel %vm3734_vm15, %v3735_v44, 0.0 }
 0x1b8   :  { %v1144_v22 = vpop.permute.xlu1 %1143  ;;  %vm1245_vm2 = vcmp.lt.f32.partialorder %v3720_v0, %v3719_v45  ;;  %vm1249_vm7 = vcmp.lt.f32.partialorder %v3745_v1, %v3744_v5  ;;  %v3749_v45 = vld [vmem:[#allocation89_spill] sm:$0xff]  ;;  %v3751_v0 = vld [vmem:[#allocation88_spill] sm:$0xff] }
 0x1b9   :  { %v1207_v40 = vmul.f32 %v1144_v22, %v3699_v36  ;;  %v1335_v28 = vmul.f32 %v1303_v33, %v1144_v22  ;;  %v3724_v22 = vld [vmem:[#allocation80_spill] sm:$0xff]  ;;  %v3726_v36 = vld [vmem:[#allocation97_spill] sm:$0xff]  ;;  %vm3750_vm12 = vnez %v3749_v45 }
 0x1ba   :  { %v1152_v2 = vpop.permute.xlu0 %1151  ;;  %v1278_v33 = vmul.f32 %v3724_v22, %v3724_v22  ;;  %v1279_v39 = vmul.f32 %v3726_v36, %v3726_v36 }
 0x1bb   :  { %v1366_v49 = vadd.f32 %v1365_v51, %v1207_v40  ;;  %v1398_v41 = vadd.f32 %v1397_v7, %v1335_v28  ;;  %v1209_v10 = vmul.f32 %v1152_v2, %v3708_v24  ;;  %v1337_v21 = vmul.f32 %v1305_v32, %v1152_v2  ;;  %v3727_v28 = vld [vmem:[#allocation40_spill] sm:$0xff] }
 0x1bc   :  { %v1309_v40 = vsel %vm1245_vm2, %v1277_v17, 0.0  ;;  %vm1247_vm1 = vcmp.lt.f32.partialorder %v3728_v57, %v3727_v28  ;;  %v1214_v32 = vmul.f32 %v1172_v13, %v3736_v26 }
 0x1bd   :  { %v1367_v18 = vadd.f32 %v1366_v49, %v1208_v38  ;;  %v1399_v30 = vadd.f32 %v1398_v41, %v1336_v48  ;;  %v1310_v49 = vsel %vm1246_vm9, %v1278_v33, 0.0 }
 0x1be   :  { %v1342_v53 = vmul.f32 %v1310_v49, %v1172_v13 }
 0x1bf   :  { %v1368_v54 = vadd.f32 %v1367_v18, %v1209_v10  ;;  %v1400_v9 = vadd.f32 %v1399_v30, %v1337_v21  ;;  %v3737_v10 = vld [vmem:[#allocation98_spill] sm:$0xff]  ;;  %v3738_v21 = vld [vmem:[#allocation83_spill] sm:$0xff]  ;;  %v1311_v18 = vsel %vm1247_vm1, %v1279_v39, 0.0  ;;  %v3739_v30 = vld [vmem:[#allocation96_spill] sm:$0xff] }
 0x1c0   :  { %v1156_v15 = vpop.permute.xlu1 %1155  ;;  %vm1248_vm10 = vcmp.lt.f32.partialorder %v3738_v21, %v3737_v10  ;;  %v1280_v56 = vmul.f32 %v3739_v30, %v3739_v30 }
 0x1c1   :  { %v1210_v27 = vmul.f32 %v1156_v15, %v3714_v19  ;;  %v1338_v43 = vmul.f32 %v1306_v52, %v1156_v15  ;;  %v3743_v15 = vld [vmem:[#allocation32_spill] sm:$0xff] }
 0x1c2   :  { %v1164_v4 = vpop.permute.xlu0 %1163  ;;  %v1281_v52 = vmul.f32 %v3743_v15, %v3743_v15  ;;  %v1312_v12 = vsel %vm1248_vm10, %v1280_v56, 0.0 }
 0x1c3   :  { %v1369_v11 = vadd.f32 %v1368_v54, %v1210_v27  ;;  %v1401_v50 = vadd.f32 %v1400_v9, %v1338_v43  ;;  %v1212_v63 = vmul.f32 %v1164_v4, %v3723_v60  ;;  %v1340_v51 = vmul.f32 %v1308_v37, %v1164_v4  ;;  %v1184_v43 = vpop.permute.xlu2 %1183 }
 0x1c4   :  { %v3752_v37 = vsel %vm3750_vm12, %v3751_v0, 0.0 }
 0x1c5   :  { %v1370_v7 = vadd.f32 %v1369_v11, %v1211_v8  ;;  %v1402_v2 = vadd.f32 %v1401_v50, %v1339_v35  ;;  %v3748_v8 = vsel %vm2943_vm4, %v3747_v29, 0.0  ;;  %v1313_v50 = vsel %vm1249_vm7, %v1281_v52, 0.0 }
 0x1c6   :  { %v1217_v61 = vmul.f32 %v1184_v43, %v3752_v37  ;;  %v1345_v17 = vmul.f32 %v1313_v50, %v1184_v43 }
 0x1c7   :  { %v1371_v6 = vadd.f32 %v1370_v7, %v1212_v63  ;;  %v1403_v47 = vadd.f32 %v1402_v2, %v1340_v51 }
 0x1c9   :  { %v1168_v55 = vpop.permute.xlu1 %1167 }
 0x1ca   :  { %v1213_v38 = vmul.f32 %v1168_v55, %v3732_v23  ;;  %v1341_v48 = vmul.f32 %v1309_v40, %v1168_v55  ;;  %v1176_v41 = vpop.permute.xlu0 %1175 }
 0x1cb   :  { %v1215_v54 = vmul.f32 %v1176_v41, %v3742_v16  ;;  %v1343_v9 = vmul.f32 %v1311_v18, %v1176_v41 }
 0x1cc   :  { %v1372_v46 = vadd.f32 %v1371_v6, %v1213_v38  ;;  %v1404_v24 = vadd.f32 %v1403_v47, %v1341_v48 }
 0x1ce   :  { %v1373_v4 = vadd.f32 %v1372_v46, %v1214_v32  ;;  %v1405_v58 = vadd.f32 %v1404_v24, %v1342_v53 }
 0x1d0   :  { %v1374_v19 = vadd.f32 %v1373_v4, %v1215_v54  ;;  %v1406_v27 = vadd.f32 %v1405_v58, %v1343_v9 }
 0x1d3   :  { %v1180_v3 = vpop.permute.xlu1 %1179 }
 0x1d4   :  { %v1216_v35 = vmul.f32 %v1180_v3, %v3748_v8  ;;  %v1344_v11 = vmul.f32 %v1312_v12, %v1180_v3 }
 0x1d6   :  { %v1375_v60 = vadd.f32 %v1374_v19, %v1216_v35  ;;  %v1407_v63 = vadd.f32 %v1406_v27, %v1344_v11 }
 0x1d8   :  { %v1376_v51 = vadd.f32 %v1375_v60, %v1217_v61  ;;  %v1408_v7 = vadd.f32 %v1407_v63, %v1345_v17 }
 0x1da   :  { %1377 = vst [vmem:[#allocation5] sm:$0xff] %v1376_v51 }
 0x1db   :  { %1409 = vst [vmem:[#allocation6] sm:$0xff] %v1408_v7  ;;  %1420 = dma.vmem_to_hbm [thread:$0]  %s1416_s1, 128, %s1418_s27, [#allocation4]  }
 0x1dc   :  { %1431 = dma.vmem_to_hbm [thread:$0]  %s1427_s29, 128, %s1429_s6, [#allocation7]  }
 0x1dd   :  { %1661 = dma.done.wait [#allocation4], 128  }
 0x1de   :  { %1662 = vsyncadd [#allocation4], 4294967168 }
 0x1df   :  { %1663 = dma.done.wait [#allocation7], 128  }
 0x1e0   :  { %1664 = vsyncadd [#allocation7], 4294967168 }
 0x1e1   :  { %1440 = vsyncpa [#allocation3], 1 }
 0x1e2   :  { %1441 = vsyncpa [#allocation4], 1 }
 0x1e3   :  { %1442 = vsyncpa [#allocation7], 1 }

</bundles_post_ra>
